<compile_context>
chip_gen: v5e
topology: v5e:2x2
jax: 0.10.0
libtpu: 0.0.40
codegen_flags: <defaults>
</compile_context>

<pallas_src>
import numpy as np
import jax
import jax.numpy as jnp
from jax.experimental import pallas as pl
from jax.experimental.pallas import tpu as pltpu

BN_EPS = 1e-5
BN_SCALE = float(1.0 / np.sqrt(1.0 + BN_EPS))  # eval BN, default running stats
NEG_INF = -1e30


# ---------------------------------------------------------------------------
# Host-side constant-matrix builders (numpy, built once per forward).
# Lane-flattened layout:  row = h (sublanes),  lane = w*C + c  (dense, <=128).
# A 3x3 conv becomes   sum_kh  relu(rows[kh:kh+H]) @ B_kh   with B_kh banded.
# ---------------------------------------------------------------------------

def _conv1x1_matrix(w, width, scale):
    # w: (Cin, Cout)  ->  block-diagonal (W*Cin, W*Cout), BN scale folded.
    w = np.asarray(w, np.float32) * np.asarray(scale, np.float32)[None, :]
    return np.kron(np.eye(width, dtype=np.float32), w)


def _conv3x3_band_matrices(w, width, scale):
    # w: (3, 3, Cin, Cout) -> 3 banded matrices (W*Cin, W*Cout), one per kh.
    w = np.asarray(w, np.float32) * np.asarray(scale, np.float32)[None, None, None, :]
    cin, cout = w.shape[2], w.shape[3]
    mats = []
    for kh in range(3):
        m = np.zeros((width * cin, width * cout), np.float32)
        for wo in range(width):
            for kw in range(3):
                wi = wo + kw - 1                      # pad=1; OOB columns = zero pad
                if 0 <= wi < width:
                    m[wi * cin:(wi + 1) * cin, wo * cout:(wo + 1) * cout] = w[kh, kw]
        mats.append(m)
    return mats


def _avgpool3x3_band_matrices(channels, width):
    # AvgPool3x3(s=1, p=1, count_include_pad=True) == conv with weight I_C/9.
    eye9 = np.tile((np.eye(channels, dtype=np.float32) / 9.0)[None, None], (3, 3, 1, 1))
    return _conv3x3_band_matrices(eye9, width, np.ones((channels,), np.float32))


def _convT3x3_s2_matrices(w, width_in, scale):
    # ConvTranspose2d(k=3, s=2, p=1, output_padding=1), weight layout
    # w[kh, kw, cin, cout]:  out[2i-1+kh, 2j-1+kw, co] += x[i, j, ci] * w[kh, kw, ci, co]
    # (for real PyTorch weights: w = W_pt.transpose(2, 3, 0, 1)).
    # Row-parity decomposition: even output rows use input row m (kh=1);
    # odd rows use rows m (kh=2) and m+1 (kh=0).  No zero-inserted image at all.
    w = np.asarray(w, np.float32) * np.asarray(scale, np.float32)[None, None, None, :]
    cin, cout = w.shape[2], w.shape[3]

    def band(kh):
        m = np.zeros((width_in * cin, 2 * width_in * cout), np.float32)
        for q in range(width_in):
            m[q * cin:(q + 1) * cin, (2 * q) * cout:(2 * q + 1) * cout] = w[kh, 1]
            m[q * cin:(q + 1) * cin, (2 * q + 1) * cout:(2 * q + 2) * cout] = w[kh, 2]
            if q + 1 < width_in:
                m[(q + 1) * cin:(q + 2) * cin, (2 * q + 1) * cout:(2 * q + 2) * cout] = w[kh, 0]
        return m

    return band(1), band(2), band(0)   # even rows, odd rows (row m), odd rows (row m+1)


def _interp_matrices(size_in, size_out, channels):
    # F.interpolate(mode='nearest'): src = floor(dst * in / out), as two 0/1 matmuls.
    (hi, wi), (ho, wo) = size_in, size_out
    sh = np.zeros((ho, hi), np.float32)
    sh[np.arange(ho), (np.arange(ho) * hi) // ho] = 1.0
    sw = np.zeros((wo, wi), np.float32)
    sw[np.arange(wo), (np.arange(wo) * wi) // wo] = 1.0
    swc = np.kron(sw, np.eye(channels, dtype=np.float32)).T.copy()   # (Wi*C, Wo*C)
    return sh, swc


# ---------------------------------------------------------------------------
# Fused cell kernel (one grid step = one image; all states resident in VMEM).
# ---------------------------------------------------------------------------

def _make_cell_kernel(n_in, C, H0, W0, H1, W1, pre_idx, node_plan):
    m_pre0, m_pre1, kt_even, kt_lo, kt_hi = pre_idx
    W1o = 2 * W1

    def kernel(*args):
        refs = args[:n_in]
        out_ref = args[n_in]
        st_ref, s1p_ref = args[n_in + 1:]

        def dot(a, b):
            return jnp.dot(a, b, preferred_element_type=jnp.float32)

        # Zero the canvases: padded borders / unused lanes must read as 0.
        st_ref[...] = jnp.zeros(st_ref.shape, jnp.float32)
        s1p_ref[...] = jnp.zeros(s1p_ref.shape, jnp.float32)

        # ---- preprocess0: ReLU -> 1x1 conv -> BN(eval)            => state 0
        st_ref[0, 1:1 + H0, 0:W0 * C] = dot(jnp.maximum(refs[0][0], 0.0), refs[m_pre0][...])

        # ---- preprocess1: ReLU -> 1x1 conv (C1 -> 4C) -> BN(eval) => s1p
        s1p_ref[0:H1, :] = dot(jnp.maximum(refs[1][0], 0.0), refs[m_pre1][...])

        # ---- preprocess1_: ReLU -> ConvTranspose2d(3x3, s=2) -> BN => state 1 (2H1 x 2W1)
        rows_m = jnp.maximum(s1p_ref[0:H1, :], 0.0)
        rows_m1 = jnp.maximum(s1p_ref[1:H1 + 1, :], 0.0)       # last row is the zero pad
        even_rows = dot(rows_m, refs[kt_even][...])
        odd_rows = dot(rows_m, refs[kt_lo][...]) + dot(rows_m1, refs[kt_hi][...])
        for m in range(H1):
            st_ref[1, 1 + 2 * m:2 + 2 * m, 0:W1o * C] = even_rows[m:m + 1, :]
            st_ref[1, 2 + 2 * m:3 + 2 * m, 0:W1o * C] = odd_rows[m:m + 1, :]

        # ---- node ops (assumed table, see TODO at top of file)
        def op_value(br):
            sid, op, mats = br["sid"], br["op"], br["mats"]
            hs, ws = br["size"]
            L = ws * C
            if op == 1:                                   # identity
                return st_ref[sid, 1:1 + hs, 0:L]
            if op in (0, 2):                              # ReLU-conv3x3-BN / avgpool3x3
                acc = None
                for kh in range(3):
                    base = st_ref[sid, kh:kh + hs, 0:L]
                    if op == 0:
                        base = jnp.maximum(base, 0.0)     # ReLU before conv; zero pad stays 0
                    part = dot(base, refs[mats[kh]][...])
                    acc = part if acc is None else acc + part
                return acc
            # op == 3: maxpool3x3 (stride 1, pad 1, -inf padding)
            neg = jnp.full((hs, C), NEG_INF, jnp.float32)
            acc = None
            for kh in range(3):
                base = st_ref[sid, kh:kh + hs, 0:L]
                if kh != 1:                               # H-border pad rows -> -inf
                    row = jax.lax.broadcasted_iota(jnp.int32, (hs, L), 0)
                    ok = (row >= 1) if kh == 0 else (row <= hs - 2)
                    base = jnp.where(ok, base, NEG_INF)
                for tap in (jnp.concatenate([neg, base[:, :L - C]], axis=1),   # w - 1
                            base,                                               # w
                            jnp.concatenate([base[:, C:], neg], axis=1)):       # w + 1
                    acc = tap if acc is None else jnp.maximum(acc, tap)
            return acc

        def maybe_interp(val, br):
            if br["interp"] is None:
                return val
            sh_idx, swc_idx = br["interp"]
            return dot(refs[sh_idx][...], dot(val, refs[swc_idx][...]))

        # ---- intermediate nodes; final torch.cat fused into lane-dense output writes
        for i, (bx, by, (ho, wo)) in enumerate(node_plan):
            s = maybe_interp(op_value(bx), bx) + maybe_interp(op_value(by), by)
            st_ref[2 + i, 1:1 + ho, 0:wo * C] = s         # keep resident for later nodes
            out_ref[i, 0, :, :] = s                       # concat slab k = node k

    return kernel


# ---------------------------------------------------------------------------
# Public wrapper: NCHW in / NCHW out, one pallas_call for the whole cell.
# ---------------------------------------------------------------------------

def cellup_forward(s0_nchw, s1_nchw, arch, params, nodes, channels):
    N, C0, H0, W0 = s0_nchw.shape
    _, C1, H1, W1 = s1_nchw.shape
    C = channels

    # NCHW -> lane-flattened NHWC rows: (N, H, W*C), channels innermost on lanes.
    s0_flat = jnp.transpose(s0_nchw, (0, 2, 3, 1)).reshape(N, H0, W0 * C0)
    s1_flat = jnp.transpose(s1_nchw, (0, 2, 3, 1)).reshape(N, H1, W1 * C1)

    bn_c = np.full((C,), BN_SCALE, np.float32)        # per-channel eval-BN scale
    bn_4c = np.full((4 * C,), BN_SCALE, np.float32)

    operands = [s0_flat, s1_flat]

    def add(mat):
        operands.append(jnp.asarray(mat, jnp.float32))
        return len(operands) - 1

    pre_idx = (
        add(_conv1x1_matrix(params["w_pre0"], W0, bn_c)),       # (W0*C0, W0*C)
        add(_conv1x1_matrix(params["w_pre1"], W1, bn_4c)),      # (W1*C1, W1*4C)
    ) + tuple(add(m) for m in _convT3x3_s2_matrices(params["w_pre1t"], W1, bn_c))

    # static shape inference over the (static) architecture + operand packing
    sizes = [(H0, W0), (2 * H1, 2 * W1)]
    interp_cache = {}

    def interp_slots(size_in, size_out):
        if size_in == size_out:
            return None
        key = (size_in, size_out)
        if key not in interp_cache:
            sh, swc = _interp_matrices(size_in, size_out, C)
            interp_cache[key] = (add(sh), add(swc))
        return interp_cache[key]

    def branch(sid, op, w):
        hs, ws = sizes[sid]
        if op == 0:
            mats = tuple(add(m) for m in _conv3x3_band_matrices(w, ws, bn_c))
        elif op == 2:
            mats = tuple(add(m) for m in _avgpool3x3_band_matrices(C, ws))
        elif op in (1, 3):
            mats = None
        else:
            raise ValueError(f"unknown op {op}")
        return {"sid": sid, "op": op, "mats": mats, "size": (hs, ws)}

    node_plan = []
    for i in range(nodes):
        x_id, x_op, y_id, y_op = arch[4 * i:4 * i + 4]
        bx = branch(x_id, x_op, params.get(f"node{i}_x"))
        by = branch(y_id, y_op, params.get(f"node{i}_y"))
        out_sz = (max(bx["size"][0], by["size"][0]), max(bx["size"][1], by["size"][1]))
        bx["interp"] = interp_slots(bx["size"], out_sz)
        by["interp"] = interp_slots(by["size"], out_sz)
        node_plan.append((bx, by, out_sz))
        sizes.append(out_sz)

    H_out, W_out = sizes[-1]
    assert all(sz == (H_out, W_out) for sz in sizes[2:]), sizes   # torch.cat needs equal H, W

    n_in = len(operands)
    h_max = max(h for h, _ in sizes)
    l_max = max(w for _, w in sizes) * C

    kernel = _make_cell_kernel(n_in, C, H0, W0, H1, W1, pre_idx, node_plan)

    def _const_map(rank):
        def index_map(n):
            return (0,) * rank
        return index_map

    in_specs = [
        pl.BlockSpec((1, H0, W0 * C0), lambda n: (n, 0, 0)),
        pl.BlockSpec((1, H1, W1 * C1), lambda n: (n, 0, 0)),
    ] + [pl.BlockSpec(operands[k].shape, _const_map(operands[k].ndim)) for k in range(2, n_in)]

    out_flat = pl.pallas_call(
        kernel,
        out_shape=jax.ShapeDtypeStruct((nodes, N, H_out, W_out * C), jnp.float32),
        grid=(N,),
        in_specs=in_specs,
        out_specs=pl.BlockSpec((nodes, 1, H_out, W_out * C), lambda n: (0, n, 0, 0)),
        scratch_shapes=[
            pltpu.VMEM((2 + nodes, h_max + 2, l_max), jnp.float32),   # padded state canvases
            pltpu.VMEM((H1 + 2, W1 * 4 * C), jnp.float32),            # preprocess1 output
        ],
        compiler_params=pltpu.CompilerParams(dimension_semantics=("parallel",)),
    )(*operands)

    # (nodes, N, H, W*C) -> NCHW with torch.cat(dim=1) channel ordering (left to XLA).
    out = out_flat.reshape(nodes, N, H_out, W_out, C)
    out = jnp.transpose(out, (1, 0, 4, 2, 3)).reshape(N, nodes * C, H_out, W_out)
    return out


# --------------------------------- main ------------------------------------

if __name__ == "__main__":
    N, ch_prev_2, ch_prev, C, nodes = 2, 6, 10, 8, 3

    key = jax.random.PRNGKey(0)
    ks = jax.random.split(key, 16)
    s0 = jax.random.normal(ks[0], (N, ch_prev_2, 16, 16), jnp.float32)   # encoder skip
    s1 = jax.random.normal(ks[1], (N, ch_prev, 6, 6), jnp.float32)       # prev decoder state

    params = {
        "w_pre0": 0.1 * jax.random.normal(ks[2], (ch_prev_2, C), jnp.float32),
        "w_pre1": 0.1 * jax.random.normal(ks[3], (ch_prev, 4 * C), jnp.float32),
        "w_pre1t": 0.1 * jax.random.normal(ks[4], (3, 3, 4 * C, C), jnp.float32),
    }
    for i in range(nodes):
        params[f"node{i}_x"] = 0.1 * jax.random.normal(ks[5 + 2 * i], (3, 3, C, C), jnp.float32)
        params[f"node{i}_y"] = 0.1 * jax.random.normal(ks[6 + 2 * i], (3, 3, C, C), jnp.float32)

    # arch = [x_id, x_op, y_id, y_op] per node
    arch = [0, 0, 1, 1,   # node0: conv3x3(s0) + identity(s1, upsampled 12->16)
            1, 2, 2, 3,   # node1: avgpool(s1, upsampled) + maxpool(node0)
            0, 1, 3, 0]   # node2: identity(s0) + conv3x3(node1)

    out = cellup_forward(s0, s1, arch, params, nodes, C)
    out = jax.block_until_ready(out)
    assert out.shape == (N, nodes * C, 16, 16), out.shape
    assert bool(jnp.all(jnp.isfinite(out)))
    print("KERNEL_OK")
</pallas_src>

<mosaic_0001>
module attributes {stable_mosaic.version = 11 : i64} {
  func.func @kernel(%arg0: i32, %arg1: memref<1x16x96xf32, #tpu.memory_space<vmem>>, %arg2: memref<1x6x60xf32, #tpu.memory_space<vmem>>, %arg3: memref<96x128xf32, #tpu.memory_space<vmem>>, %arg4: memref<60x192xf32, #tpu.memory_space<vmem>>, %arg5: memref<192x96xf32, #tpu.memory_space<vmem>>, %arg6: memref<192x96xf32, #tpu.memory_space<vmem>>, %arg7: memref<192x96xf32, #tpu.memory_space<vmem>>, %arg8: memref<128x128xf32, #tpu.memory_space<vmem>>, %arg9: memref<128x128xf32, #tpu.memory_space<vmem>>, %arg10: memref<128x128xf32, #tpu.memory_space<vmem>>, %arg11: memref<16x12xf32, #tpu.memory_space<vmem>>, %arg12: memref<96x128xf32, #tpu.memory_space<vmem>>, %arg13: memref<96x96xf32, #tpu.memory_space<vmem>>, %arg14: memref<96x96xf32, #tpu.memory_space<vmem>>, %arg15: memref<96x96xf32, #tpu.memory_space<vmem>>, %arg16: memref<128x128xf32, #tpu.memory_space<vmem>>, %arg17: memref<128x128xf32, #tpu.memory_space<vmem>>, %arg18: memref<128x128xf32, #tpu.memory_space<vmem>>, %arg19: memref<3x1x16x128xf32, #tpu.memory_space<vmem>>, %arg20: memref<5x18x128xf32, #tpu.memory_space<vmem>>, %arg21: memref<8x192xf32, #tpu.memory_space<vmem>>) attributes {dimension_semantics = [#tpu.dimension_semantics<parallel>], iteration_bounds = array<i64: 2>, scalar_prefetch = 0 : i64, scratch_operands = 2 : i64, tpu.core_type = #tpu.core_type<tc>, window_params = [{transform_indices = @transform_0, window_bounds = array<i64: 1, 16, 96>}, {transform_indices = @transform_1, window_bounds = array<i64: 1, 6, 60>}, {pipeline_mode = #tpu.pipeline_mode<synchronous>, transform_indices = @transform_2, window_bounds = array<i64: 96, 128>}, {pipeline_mode = #tpu.pipeline_mode<synchronous>, transform_indices = @transform_3, window_bounds = array<i64: 60, 192>}, {pipeline_mode = #tpu.pipeline_mode<synchronous>, transform_indices = @transform_4, window_bounds = array<i64: 192, 96>}, {pipeline_mode = #tpu.pipeline_mode<synchronous>, transform_indices = @transform_5, window_bounds = array<i64: 192, 96>}, {pipeline_mode = #tpu.pipeline_mode<synchronous>, transform_indices = @transform_6, window_bounds = array<i64: 192, 96>}, {pipeline_mode = #tpu.pipeline_mode<synchronous>, transform_indices = @transform_7, window_bounds = array<i64: 128, 128>}, {pipeline_mode = #tpu.pipeline_mode<synchronous>, transform_indices = @transform_8, window_bounds = array<i64: 128, 128>}, {pipeline_mode = #tpu.pipeline_mode<synchronous>, transform_indices = @transform_9, window_bounds = array<i64: 128, 128>}, {pipeline_mode = #tpu.pipeline_mode<synchronous>, transform_indices = @transform_10, window_bounds = array<i64: 16, 12>}, {pipeline_mode = #tpu.pipeline_mode<synchronous>, transform_indices = @transform_11, window_bounds = array<i64: 96, 128>}, {pipeline_mode = #tpu.pipeline_mode<synchronous>, transform_indices = @transform_12, window_bounds = array<i64: 96, 96>}, {pipeline_mode = #tpu.pipeline_mode<synchronous>, transform_indices = @transform_13, window_bounds = array<i64: 96, 96>}, {pipeline_mode = #tpu.pipeline_mode<synchronous>, transform_indices = @transform_14, window_bounds = array<i64: 96, 96>}, {pipeline_mode = #tpu.pipeline_mode<synchronous>, transform_indices = @transform_15, window_bounds = array<i64: 128, 128>}, {pipeline_mode = #tpu.pipeline_mode<synchronous>, transform_indices = @transform_16, window_bounds = array<i64: 128, 128>}, {pipeline_mode = #tpu.pipeline_mode<synchronous>, transform_indices = @transform_17, window_bounds = array<i64: 128, 128>}, {transform_indices = @transform_18, window_bounds = array<i64: 3, 1, 16, 128>}]} {
    %cst = arith.constant 0.000000e+00 : f32
    %0 = vector.broadcast %cst : f32 to vector<5x18x128xf32>
    %c0 = arith.constant 0 : index
    %c0_0 = arith.constant 0 : index
    %c0_1 = arith.constant 0 : index
    %1 = vector.load %arg20[%c0, %c0_0, %c0_1] : memref<5x18x128xf32, #tpu.memory_space<vmem>>, vector<5x18x128xf32>
    tpu.vector_store %arg20[%c0, %c0_0, %c0_1], %0 {strides = array<i32>} : memref<5x18x128xf32, #tpu.memory_space<vmem>>, vector<5x18x128xf32>,
    %cst_2 = arith.constant 0.000000e+00 : f32
    %2 = vector.broadcast %cst_2 : f32 to vector<8x192xf32>
    %c0_3 = arith.constant 0 : index
    %c0_4 = arith.constant 0 : index
    %3 = vector.load %arg21[%c0_3, %c0_4] : memref<8x192xf32, #tpu.memory_space<vmem>>, vector<8x192xf32>
    tpu.vector_store %arg21[%c0_3, %c0_4], %2 {strides = array<i32>} : memref<8x192xf32, #tpu.memory_space<vmem>>, vector<8x192xf32>,
    %c0_5 = arith.constant 0 : index
    %c0_6 = arith.constant 0 : index
    %c0_7 = arith.constant 0 : index
    %4 = vector.load %arg1[%c0_5, %c0_6, %c0_7] : memref<1x16x96xf32, #tpu.memory_space<vmem>>, vector<1x16x96xf32>
    %5 = vector.shape_cast %4 : vector<1x16x96xf32> to vector<16x96xf32>
    %cst_8 = arith.constant 0.000000e+00 : f32
    %6 = vector.broadcast %cst_8 : f32 to vector<16x96xf32>
    %7 = arith.maximumf %5, %6 : vector<16x96xf32>
    %c0_9 = arith.constant 0 : index
    %c0_10 = arith.constant 0 : index
    %8 = vector.load %arg3[%c0_9, %c0_10] : memref<96x128xf32, #tpu.memory_space<vmem>>, vector<96x128xf32>
    %cst_11 = arith.constant dense<0.000000e+00> : vector<16x128xf32>
    %9 = tpu.matmul %7, %8, %cst_11 {dimension_numbers = #tpu.dot_dimension_numbers<[1], [0], [0], [1], [0, 0, 1, 1], [], []>} : vector<16x96xf32>, vector<96x128xf32>, vector<16x128xf32> -> vector<16x128xf32>
    %c0_12 = arith.constant 0 : index
    %c1 = arith.constant 1 : index
    %c0_13 = arith.constant 0 : index
    %10 = vector.load %arg20[%c0_12, %c1, %c0_13] : memref<5x18x128xf32, #tpu.memory_space<vmem>>, vector<1x16x128xf32>
    %11 = vector.shape_cast %10 : vector<1x16x128xf32> to vector<16x128xf32>
    %12 = vector.shape_cast %9 : vector<16x128xf32> to vector<1x16x128xf32>
    tpu.vector_store %arg20[%c0_12, %c1, %c0_13], %12 {strides = array<i32>} : memref<5x18x128xf32, #tpu.memory_space<vmem>>, vector<1x16x128xf32>,
    %c0_14 = arith.constant 0 : index
    %c0_15 = arith.constant 0 : index
    %c0_16 = arith.constant 0 : index
    %13 = vector.load %arg2[%c0_14, %c0_15, %c0_16] : memref<1x6x60xf32, #tpu.memory_space<vmem>>, vector<1x6x60xf32>
    %14 = vector.shape_cast %13 : vector<1x6x60xf32> to vector<6x60xf32>
    %cst_17 = arith.constant 0.000000e+00 : f32
    %15 = vector.broadcast %cst_17 : f32 to vector<6x60xf32>
    %16 = arith.maximumf %14, %15 : vector<6x60xf32>
    %c0_18 = arith.constant 0 : index
    %c0_19 = arith.constant 0 : index
    %17 = vector.load %arg4[%c0_18, %c0_19] : memref<60x192xf32, #tpu.memory_space<vmem>>, vector<60x192xf32>
    %cst_20 = arith.constant dense<0.000000e+00> : vector<6x192xf32>
    %18 = tpu.matmul %16, %17, %cst_20 {dimension_numbers = #tpu.dot_dimension_numbers<[1], [0], [0], [1], [0, 0, 1, 1], [], []>} : vector<6x60xf32>, vector<60x192xf32>, vector<6x192xf32> -> vector<6x192xf32>
    %c0_21 = arith.constant 0 : index
    %c0_22 = arith.constant 0 : index
    %19 = vector.load %arg21[%c0_21, %c0_22] : memref<8x192xf32, #tpu.memory_space<vmem>>, vector<6x192xf32>
    tpu.vector_store %arg21[%c0_21, %c0_22], %18 {strides = array<i32>} : memref<8x192xf32, #tpu.memory_space<vmem>>, vector<6x192xf32>,
    %c0_23 = arith.constant 0 : index
    %c0_24 = arith.constant 0 : index
    %20 = vector.load %arg21[%c0_23, %c0_24] : memref<8x192xf32, #tpu.memory_space<vmem>>, vector<6x192xf32>
    %cst_25 = arith.constant 0.000000e+00 : f32
    %21 = vector.broadcast %cst_25 : f32 to vector<6x192xf32>
    %22 = arith.maximumf %20, %21 : vector<6x192xf32>
    %c1_26 = arith.constant 1 : index
    %c0_27 = arith.constant 0 : index
    %23 = vector.load %arg21[%c1_26, %c0_27] : memref<8x192xf32, #tpu.memory_space<vmem>>, vector<6x192xf32>
    %cst_28 = arith.constant 0.000000e+00 : f32
    %24 = vector.broadcast %cst_28 : f32 to vector<6x192xf32>
    %25 = arith.maximumf %23, %24 : vector<6x192xf32>
    %c0_29 = arith.constant 0 : index
    %c0_30 = arith.constant 0 : index
    %26 = vector.load %arg5[%c0_29, %c0_30] : memref<192x96xf32, #tpu.memory_space<vmem>>, vector<192x96xf32>
    %cst_31 = arith.constant dense<0.000000e+00> : vector<6x96xf32>
    %27 = tpu.matmul %22, %26, %cst_31 {dimension_numbers = #tpu.dot_dimension_numbers<[1], [0], [0], [1], [0, 0, 1, 1], [], []>} : vector<6x192xf32>, vector<192x96xf32>, vector<6x96xf32> -> vector<6x96xf32>
    %c0_32 = arith.constant 0 : index
    %c0_33 = arith.constant 0 : index
    %28 = vector.load %arg6[%c0_32, %c0_33] : memref<192x96xf32, #tpu.memory_space<vmem>>, vector<192x96xf32>
    %cst_34 = arith.constant dense<0.000000e+00> : vector<6x96xf32>
    %29 = tpu.matmul %22, %28, %cst_34 {dimension_numbers = #tpu.dot_dimension_numbers<[1], [0], [0], [1], [0, 0, 1, 1], [], []>} : vector<6x192xf32>, vector<192x96xf32>, vector<6x96xf32> -> vector<6x96xf32>
    %c0_35 = arith.constant 0 : index
    %c0_36 = arith.constant 0 : index
    %30 = vector.load %arg7[%c0_35, %c0_36] : memref<192x96xf32, #tpu.memory_space<vmem>>, vector<192x96xf32>
    %cst_37 = arith.constant dense<0.000000e+00> : vector<6x96xf32>
    %31 = tpu.matmul %25, %30, %cst_37 {dimension_numbers = #tpu.dot_dimension_numbers<[1], [0], [0], [1], [0, 0, 1, 1], [], []>} : vector<6x192xf32>, vector<192x96xf32>, vector<6x96xf32> -> vector<6x96xf32>
    %32 = arith.addf %29, %31 : vector<6x96xf32>
    %33 = vector.extract_strided_slice %27 {offsets = [0, 0], sizes = [1, 96], strides = [1, 1]} : vector<6x96xf32> to vector<1x96xf32>
    %c1_38 = arith.constant 1 : index
    %c1_39 = arith.constant 1 : index
    %c0_40 = arith.constant 0 : index
    %34 = vector.load %arg20[%c1_38, %c1_39, %c0_40] : memref<5x18x128xf32, #tpu.memory_space<vmem>>, vector<1x1x96xf32>
    %35 = vector.shape_cast %34 : vector<1x1x96xf32> to vector<1x96xf32>
    %36 = vector.shape_cast %33 : vector<1x96xf32> to vector<1x1x96xf32>
    tpu.vector_store %arg20[%c1_38, %c1_39, %c0_40], %36 {strides = array<i32>} : memref<5x18x128xf32, #tpu.memory_space<vmem>>, vector<1x1x96xf32>,
    %37 = vector.extract_strided_slice %32 {offsets = [0, 0], sizes = [1, 96], strides = [1, 1]} : vector<6x96xf32> to vector<1x96xf32>
    %c1_41 = arith.constant 1 : index
    %c2 = arith.constant 2 : index
    %c0_42 = arith.constant 0 : index
    %38 = vector.load %arg20[%c1_41, %c2, %c0_42] : memref<5x18x128xf32, #tpu.memory_space<vmem>>, vector<1x1x96xf32>
    %39 = vector.shape_cast %38 : vector<1x1x96xf32> to vector<1x96xf32>
    %40 = vector.shape_cast %37 : vector<1x96xf32> to vector<1x1x96xf32>
    tpu.vector_store %arg20[%c1_41, %c2, %c0_42], %40 {strides = array<i32>} : memref<5x18x128xf32, #tpu.memory_space<vmem>>, vector<1x1x96xf32>,
    %41 = vector.extract_strided_slice %27 {offsets = [1, 0], sizes = [1, 96], strides = [1, 1]} : vector<6x96xf32> to vector<1x96xf32>
    %c1_43 = arith.constant 1 : index
    %c3 = arith.constant 3 : index
    %c0_44 = arith.constant 0 : index
    %42 = vector.load %arg20[%c1_43, %c3, %c0_44] : memref<5x18x128xf32, #tpu.memory_space<vmem>>, vector<1x1x96xf32>
    %43 = vector.shape_cast %42 : vector<1x1x96xf32> to vector<1x96xf32>
    %44 = vector.shape_cast %41 : vector<1x96xf32> to vector<1x1x96xf32>
    tpu.vector_store %arg20[%c1_43, %c3, %c0_44], %44 {strides = array<i32>} : memref<5x18x128xf32, #tpu.memory_space<vmem>>, vector<1x1x96xf32>,
    %45 = vector.extract_strided_slice %32 {offsets = [1, 0], sizes = [1, 96], strides = [1, 1]} : vector<6x96xf32> to vector<1x96xf32>
    %c1_45 = arith.constant 1 : index
    %c4 = arith.constant 4 : index
    %c0_46 = arith.constant 0 : index
    %46 = vector.load %arg20[%c1_45, %c4, %c0_46] : memref<5x18x128xf32, #tpu.memory_space<vmem>>, vector<1x1x96xf32>
    %47 = vector.shape_cast %46 : vector<1x1x96xf32> to vector<1x96xf32>
    %48 = vector.shape_cast %45 : vector<1x96xf32> to vector<1x1x96xf32>
    tpu.vector_store %arg20[%c1_45, %c4, %c0_46], %48 {strides = array<i32>} : memref<5x18x128xf32, #tpu.memory_space<vmem>>, vector<1x1x96xf32>,
    %49 = vector.extract_strided_slice %27 {offsets = [2, 0], sizes = [1, 96], strides = [1, 1]} : vector<6x96xf32> to vector<1x96xf32>
    %c1_47 = arith.constant 1 : index
    %c5 = arith.constant 5 : index
    %c0_48 = arith.constant 0 : index
    %50 = vector.load %arg20[%c1_47, %c5, %c0_48] : memref<5x18x128xf32, #tpu.memory_space<vmem>>, vector<1x1x96xf32>
    %51 = vector.shape_cast %50 : vector<1x1x96xf32> to vector<1x96xf32>
    %52 = vector.shape_cast %49 : vector<1x96xf32> to vector<1x1x96xf32>
    tpu.vector_store %arg20[%c1_47, %c5, %c0_48], %52 {strides = array<i32>} : memref<5x18x128xf32, #tpu.memory_space<vmem>>, vector<1x1x96xf32>,
    %53 = vector.extract_strided_slice %32 {offsets = [2, 0], sizes = [1, 96], strides = [1, 1]} : vector<6x96xf32> to vector<1x96xf32>
    %c1_49 = arith.constant 1 : index
    %c6 = arith.constant 6 : index
    %c0_50 = arith.constant 0 : index
    %54 = vector.load %arg20[%c1_49, %c6, %c0_50] : memref<5x18x128xf32, #tpu.memory_space<vmem>>, vector<1x1x96xf32>
    %55 = vector.shape_cast %54 : vector<1x1x96xf32> to vector<1x96xf32>
    %56 = vector.shape_cast %53 : vector<1x96xf32> to vector<1x1x96xf32>
    tpu.vector_store %arg20[%c1_49, %c6, %c0_50], %56 {strides = array<i32>} : memref<5x18x128xf32, #tpu.memory_space<vmem>>, vector<1x1x96xf32>,
    %57 = vector.extract_strided_slice %27 {offsets = [3, 0], sizes = [1, 96], strides = [1, 1]} : vector<6x96xf32> to vector<1x96xf32>
    %c1_51 = arith.constant 1 : index
    %c7 = arith.constant 7 : index
    %c0_52 = arith.constant 0 : index
    %58 = vector.load %arg20[%c1_51, %c7, %c0_52] : memref<5x18x128xf32, #tpu.memory_space<vmem>>, vector<1x1x96xf32>
    %59 = vector.shape_cast %58 : vector<1x1x96xf32> to vector<1x96xf32>
    %60 = vector.shape_cast %57 : vector<1x96xf32> to vector<1x1x96xf32>
    tpu.vector_store %arg20[%c1_51, %c7, %c0_52], %60 {strides = array<i32>} : memref<5x18x128xf32, #tpu.memory_space<vmem>>, vector<1x1x96xf32>,
    %61 = vector.extract_strided_slice %32 {offsets = [3, 0], sizes = [1, 96], strides = [1, 1]} : vector<6x96xf32> to vector<1x96xf32>
    %c1_53 = arith.constant 1 : index
    %c8 = arith.constant 8 : index
    %c0_54 = arith.constant 0 : index
    %62 = vector.load %arg20[%c1_53, %c8, %c0_54] : memref<5x18x128xf32, #tpu.memory_space<vmem>>, vector<1x1x96xf32>
    %63 = vector.shape_cast %62 : vector<1x1x96xf32> to vector<1x96xf32>
    %64 = vector.shape_cast %61 : vector<1x96xf32> to vector<1x1x96xf32>
    tpu.vector_store %arg20[%c1_53, %c8, %c0_54], %64 {strides = array<i32>} : memref<5x18x128xf32, #tpu.memory_space<vmem>>, vector<1x1x96xf32>,
    %65 = vector.extract_strided_slice %27 {offsets = [4, 0], sizes = [1, 96], strides = [1, 1]} : vector<6x96xf32> to vector<1x96xf32>
    %c1_55 = arith.constant 1 : index
    %c9 = arith.constant 9 : index
    %c0_56 = arith.constant 0 : index
    %66 = vector.load %arg20[%c1_55, %c9, %c0_56] : memref<5x18x128xf32, #tpu.memory_space<vmem>>, vector<1x1x96xf32>
    %67 = vector.shape_cast %66 : vector<1x1x96xf32> to vector<1x96xf32>
    %68 = vector.shape_cast %65 : vector<1x96xf32> to vector<1x1x96xf32>
    tpu.vector_store %arg20[%c1_55, %c9, %c0_56], %68 {strides = array<i32>} : memref<5x18x128xf32, #tpu.memory_space<vmem>>, vector<1x1x96xf32>,
    %69 = vector.extract_strided_slice %32 {offsets = [4, 0], sizes = [1, 96], strides = [1, 1]} : vector<6x96xf32> to vector<1x96xf32>
    %c1_57 = arith.constant 1 : index
    %c10 = arith.constant 10 : index
    %c0_58 = arith.constant 0 : index
    %70 = vector.load %arg20[%c1_57, %c10, %c0_58] : memref<5x18x128xf32, #tpu.memory_space<vmem>>, vector<1x1x96xf32>
    %71 = vector.shape_cast %70 : vector<1x1x96xf32> to vector<1x96xf32>
    %72 = vector.shape_cast %69 : vector<1x96xf32> to vector<1x1x96xf32>
    tpu.vector_store %arg20[%c1_57, %c10, %c0_58], %72 {strides = array<i32>} : memref<5x18x128xf32, #tpu.memory_space<vmem>>, vector<1x1x96xf32>,
    %73 = vector.extract_strided_slice %27 {offsets = [5, 0], sizes = [1, 96], strides = [1, 1]} : vector<6x96xf32> to vector<1x96xf32>
    %c1_59 = arith.constant 1 : index
    %c11 = arith.constant 11 : index
    %c0_60 = arith.constant 0 : index
    %74 = vector.load %arg20[%c1_59, %c11, %c0_60] : memref<5x18x128xf32, #tpu.memory_space<vmem>>, vector<1x1x96xf32>
    %75 = vector.shape_cast %74 : vector<1x1x96xf32> to vector<1x96xf32>
    %76 = vector.shape_cast %73 : vector<1x96xf32> to vector<1x1x96xf32>
    tpu.vector_store %arg20[%c1_59, %c11, %c0_60], %76 {strides = array<i32>} : memref<5x18x128xf32, #tpu.memory_space<vmem>>, vector<1x1x96xf32>,
    %77 = vector.extract_strided_slice %32 {offsets = [5, 0], sizes = [1, 96], strides = [1, 1]} : vector<6x96xf32> to vector<1x96xf32>
    %c1_61 = arith.constant 1 : index
    %c12 = arith.constant 12 : index
    %c0_62 = arith.constant 0 : index
    %78 = vector.load %arg20[%c1_61, %c12, %c0_62] : memref<5x18x128xf32, #tpu.memory_space<vmem>>, vector<1x1x96xf32>
    %79 = vector.shape_cast %78 : vector<1x1x96xf32> to vector<1x96xf32>
    %80 = vector.shape_cast %77 : vector<1x96xf32> to vector<1x1x96xf32>
    tpu.vector_store %arg20[%c1_61, %c12, %c0_62], %80 {strides = array<i32>} : memref<5x18x128xf32, #tpu.memory_space<vmem>>, vector<1x1x96xf32>,
    %c0_63 = arith.constant 0 : index
    %c0_64 = arith.constant 0 : index
    %c0_65 = arith.constant 0 : index
    %81 = vector.load %arg20[%c0_63, %c0_64, %c0_65] : memref<5x18x128xf32, #tpu.memory_space<vmem>>, vector<1x16x128xf32>
    %82 = vector.shape_cast %81 : vector<1x16x128xf32> to vector<16x128xf32>
    %cst_66 = arith.constant 0.000000e+00 : f32
    %83 = vector.broadcast %cst_66 : f32 to vector<16x128xf32>
    %84 = arith.maximumf %82, %83 : vector<16x128xf32>
    %c0_67 = arith.constant 0 : index
    %c0_68 = arith.constant 0 : index
    %85 = vector.load %arg8[%c0_67, %c0_68] : memref<128x128xf32, #tpu.memory_space<vmem>>, vector<128x128xf32>
    %cst_69 = arith.constant dense<0.000000e+00> : vector<16x128xf32>
    %86 = tpu.matmul %84, %85, %cst_69 {dimension_numbers = #tpu.dot_dimension_numbers<[1], [0], [0], [1], [0, 0, 1, 1], [], []>} : vector<16x128xf32>, vector<128x128xf32>, vector<16x128xf32> -> vector<16x128xf32>
    %c0_70 = arith.constant 0 : index
    %c1_71 = arith.constant 1 : index
    %c0_72 = arith.constant 0 : index
    %87 = vector.load %arg20[%c0_70, %c1_71, %c0_72] : memref<5x18x128xf32, #tpu.memory_space<vmem>>, vector<1x16x128xf32>
    %88 = vector.shape_cast %87 : vector<1x16x128xf32> to vector<16x128xf32>
    %cst_73 = arith.constant 0.000000e+00 : f32
    %89 = vector.broadcast %cst_73 : f32 to vector<16x128xf32>
    %90 = arith.maximumf %88, %89 : vector<16x128xf32>
    %c0_74 = arith.constant 0 : index
    %c0_75 = arith.constant 0 : index
    %91 = vector.load %arg9[%c0_74, %c0_75] : memref<128x128xf32, #tpu.memory_space<vmem>>, vector<128x128xf32>
    %cst_76 = arith.constant dense<0.000000e+00> : vector<16x128xf32>
    %92 = tpu.matmul %90, %91, %cst_76 {dimension_numbers = #tpu.dot_dimension_numbers<[1], [0], [0], [1], [0, 0, 1, 1], [], []>} : vector<16x128xf32>, vector<128x128xf32>, vector<16x128xf32> -> vector<16x128xf32>
    %93 = arith.addf %86, %92 : vector<16x128xf32>
    %c0_77 = arith.constant 0 : index
    %c2_78 = arith.constant 2 : index
    %c0_79 = arith.constant 0 : index
    %94 = vector.load %arg20[%c0_77, %c2_78, %c0_79] : memref<5x18x128xf32, #tpu.memory_space<vmem>>, vector<1x16x128xf32>
    %95 = vector.shape_cast %94 : vector<1x16x128xf32> to vector<16x128xf32>
    %cst_80 = arith.constant 0.000000e+00 : f32
    %96 = vector.broadcast %cst_80 : f32 to vector<16x128xf32>
    %97 = arith.maximumf %95, %96 : vector<16x128xf32>
    %c0_81 = arith.constant 0 : index
    %c0_82 = arith.constant 0 : index
    %98 = vector.load %arg10[%c0_81, %c0_82] : memref<128x128xf32, #tpu.memory_space<vmem>>, vector<128x128xf32>
    %cst_83 = arith.constant dense<0.000000e+00> : vector<16x128xf32>
    %99 = tpu.matmul %97, %98, %cst_83 {dimension_numbers = #tpu.dot_dimension_numbers<[1], [0], [0], [1], [0, 0, 1, 1], [], []>} : vector<16x128xf32>, vector<128x128xf32>, vector<16x128xf32> -> vector<16x128xf32>
    %100 = arith.addf %93, %99 : vector<16x128xf32>
    %c1_84 = arith.constant 1 : index
    %c1_85 = arith.constant 1 : index
    %c0_86 = arith.constant 0 : index
    %101 = vector.load %arg20[%c1_84, %c1_85, %c0_86] : memref<5x18x128xf32, #tpu.memory_space<vmem>>, vector<1x12x96xf32>
    %102 = vector.shape_cast %101 : vector<1x12x96xf32> to vector<12x96xf32>
    %c0_87 = arith.constant 0 : index
    %c0_88 = arith.constant 0 : index
    %103 = vector.load %arg11[%c0_87, %c0_88] : memref<16x12xf32, #tpu.memory_space<vmem>>, vector<16x12xf32>
    %c0_89 = arith.constant 0 : index
    %c0_90 = arith.constant 0 : index
    %104 = vector.load %arg12[%c0_89, %c0_90] : memref<96x128xf32, #tpu.memory_space<vmem>>, vector<96x128xf32>
    %cst_91 = arith.constant dense<0.000000e+00> : vector<12x128xf32>
    %105 = tpu.matmul %102, %104, %cst_91 {dimension_numbers = #tpu.dot_dimension_numbers<[1], [0], [0], [1], [0, 0, 1, 1], [], []>} : vector<12x96xf32>, vector<96x128xf32>, vector<12x128xf32> -> vector<12x128xf32>
    %cst_92 = arith.constant dense<0.000000e+00> : vector<16x128xf32>
    %106 = tpu.matmul %103, %105, %cst_92 {dimension_numbers = #tpu.dot_dimension_numbers<[1], [0], [0], [1], [0, 0, 1, 1], [], []>} : vector<16x12xf32>, vector<12x128xf32>, vector<16x128xf32> -> vector<16x128xf32>
    %107 = arith.addf %100, %106 : vector<16x128xf32>
    %c2_93 = arith.constant 2 : index
    %c1_94 = arith.constant 1 : index
    %c0_95 = arith.constant 0 : index
    %108 = vector.load %arg20[%c2_93, %c1_94, %c0_95] : memref<5x18x128xf32, #tpu.memory_space<vmem>>, vector<1x16x128xf32>
    %109 = vector.shape_cast %108 : vector<1x16x128xf32> to vector<16x128xf32>
    %110 = vector.shape_cast %107 : vector<16x128xf32> to vector<1x16x128xf32>
    tpu.vector_store %arg20[%c2_93, %c1_94, %c0_95], %110 {strides = array<i32>} : memref<5x18x128xf32, #tpu.memory_space<vmem>>, vector<1x16x128xf32>,
    %c0_96 = arith.constant 0 : index
    %c0_97 = arith.constant 0 : index
    %c0_98 = arith.constant 0 : index
    %c0_99 = arith.constant 0 : index
    %111 = vector.load %arg19[%c0_96, %c0_97, %c0_98, %c0_99] : memref<3x1x16x128xf32, #tpu.memory_space<vmem>>, vector<1x1x16x128xf32>
    %112 = vector.shape_cast %111 : vector<1x1x16x128xf32> to vector<16x128xf32>
    %113 = vector.shape_cast %107 : vector<16x128xf32> to vector<1x1x16x128xf32>
    tpu.vector_store %arg19[%c0_96, %c0_97, %c0_98, %c0_99], %113 {strides = array<i32>} : memref<3x1x16x128xf32, #tpu.memory_space<vmem>>, vector<1x1x16x128xf32>,
    %c1_100 = arith.constant 1 : index
    %c0_101 = arith.constant 0 : index
    %c0_102 = arith.constant 0 : index
    %114 = vector.load %arg20[%c1_100, %c0_101, %c0_102] : memref<5x18x128xf32, #tpu.memory_space<vmem>>, vector<1x12x96xf32>
    %115 = vector.shape_cast %114 : vector<1x12x96xf32> to vector<12x96xf32>
    %c0_103 = arith.constant 0 : index
    %c0_104 = arith.constant 0 : index
    %116 = vector.load %arg13[%c0_103, %c0_104] : memref<96x96xf32, #tpu.memory_space<vmem>>, vector<96x96xf32>
    %cst_105 = arith.constant dense<0.000000e+00> : vector<12x96xf32>
    %117 = tpu.matmul %115, %116, %cst_105 {dimension_numbers = #tpu.dot_dimension_numbers<[1], [0], [0], [1], [0, 0, 1, 1], [], []>} : vector<12x96xf32>, vector<96x96xf32>, vector<12x96xf32> -> vector<12x96xf32>
    %c1_106 = arith.constant 1 : index
    %c1_107 = arith.constant 1 : index
    %c0_108 = arith.constant 0 : index
    %118 = vector.load %arg20[%c1_106, %c1_107, %c0_108] : memref<5x18x128xf32, #tpu.memory_space<vmem>>, vector<1x12x96xf32>
    %119 = vector.shape_cast %118 : vector<1x12x96xf32> to vector<12x96xf32>
    %c0_109 = arith.constant 0 : index
    %c0_110 = arith.constant 0 : index
    %120 = vector.load %arg14[%c0_109, %c0_110] : memref<96x96xf32, #tpu.memory_space<vmem>>, vector<96x96xf32>
    %cst_111 = arith.constant dense<0.000000e+00> : vector<12x96xf32>
    %121 = tpu.matmul %119, %120, %cst_111 {dimension_numbers = #tpu.dot_dimension_numbers<[1], [0], [0], [1], [0, 0, 1, 1], [], []>} : vector<12x96xf32>, vector<96x96xf32>, vector<12x96xf32> -> vector<12x96xf32>
    %122 = arith.addf %117, %121 : vector<12x96xf32>
    %c1_112 = arith.constant 1 : index
    %c2_113 = arith.constant 2 : index
    %c0_114 = arith.constant 0 : index
    %123 = vector.load %arg20[%c1_112, %c2_113, %c0_114] : memref<5x18x128xf32, #tpu.memory_space<vmem>>, vector<1x12x96xf32>
    %124 = vector.shape_cast %123 : vector<1x12x96xf32> to vector<12x96xf32>
    %c0_115 = arith.constant 0 : index
    %c0_116 = arith.constant 0 : index
    %125 = vector.load %arg15[%c0_115, %c0_116] : memref<96x96xf32, #tpu.memory_space<vmem>>, vector<96x96xf32>
    %cst_117 = arith.constant dense<0.000000e+00> : vector<12x96xf32>
    %126 = tpu.matmul %124, %125, %cst_117 {dimension_numbers = #tpu.dot_dimension_numbers<[1], [0], [0], [1], [0, 0, 1, 1], [], []>} : vector<12x96xf32>, vector<96x96xf32>, vector<12x96xf32> -> vector<12x96xf32>
    %127 = arith.addf %122, %126 : vector<12x96xf32>
    %c0_118 = arith.constant 0 : index
    %c0_119 = arith.constant 0 : index
    %128 = vector.load %arg11[%c0_118, %c0_119] : memref<16x12xf32, #tpu.memory_space<vmem>>, vector<16x12xf32>
    %c0_120 = arith.constant 0 : index
    %c0_121 = arith.constant 0 : index
    %129 = vector.load %arg12[%c0_120, %c0_121] : memref<96x128xf32, #tpu.memory_space<vmem>>, vector<96x128xf32>
    %cst_122 = arith.constant dense<0.000000e+00> : vector<12x128xf32>
    %130 = tpu.matmul %127, %129, %cst_122 {dimension_numbers = #tpu.dot_dimension_numbers<[1], [0], [0], [1], [0, 0, 1, 1], [], []>} : vector<12x96xf32>, vector<96x128xf32>, vector<12x128xf32> -> vector<12x128xf32>
    %cst_123 = arith.constant dense<0.000000e+00> : vector<16x128xf32>
    %131 = tpu.matmul %128, %130, %cst_123 {dimension_numbers = #tpu.dot_dimension_numbers<[1], [0], [0], [1], [0, 0, 1, 1], [], []>} : vector<16x12xf32>, vector<12x128xf32>, vector<16x128xf32> -> vector<16x128xf32>
    %cst_124 = arith.constant -1.000000e+30 : f32
    %132 = vector.broadcast %cst_124 : f32 to vector<16x8xf32>
    %c2_125 = arith.constant 2 : index
    %c0_126 = arith.constant 0 : index
    %c0_127 = arith.constant 0 : index
    %133 = vector.load %arg20[%c2_125, %c0_126, %c0_127] : memref<5x18x128xf32, #tpu.memory_space<vmem>>, vector<1x16x128xf32>
    %134 = vector.shape_cast %133 : vector<1x16x128xf32> to vector<16x128xf32>
    %135 = tpu.iota {dimensions = array<i32: 0>} : vector<16x128xi32>
    %c1_i32 = arith.constant 1 : i32
    %136 = vector.broadcast %c1_i32 : i32 to vector<16x128xi32>
    %137 = arith.cmpi sge, %135, %136 : vector<16x128xi32>
    %cst_128 = arith.constant -1.000000e+30 : f32
    %138 = vector.broadcast %cst_128 : f32 to vector<16x128xf32>
    %139 = arith.select %137, %134, %138 : vector<16x128xi1>, vector<16x128xf32>
    %140 = vector.extract_strided_slice %139 {offsets = [0, 0], sizes = [16, 120], strides = [1, 1]} : vector<16x128xf32> to vector<16x120xf32>
    %141 = tpu.concatenate %132, %140 in 1 : vector<16x8xf32>, vector<16x120xf32> -> vector<16x128xf32>
    %142 = vector.extract_strided_slice %139 {offsets = [0, 8], sizes = [16, 120], strides = [1, 1]} : vector<16x128xf32> to vector<16x120xf32>
    %143 = tpu.concatenate %142, %132 in 1 : vector<16x120xf32>, vector<16x8xf32> -> vector<16x128xf32>
    %144 = arith.maximumf %141, %139 : vector<16x128xf32>
    %145 = arith.maximumf %144, %143 : vector<16x128xf32>
    %c2_129 = arith.constant 2 : index
    %c1_130 = arith.constant 1 : index
    %c0_131 = arith.constant 0 : index
    %146 = vector.load %arg20[%c2_129, %c1_130, %c0_131] : memref<5x18x128xf32, #tpu.memory_space<vmem>>, vector<1x16x128xf32>
    %147 = vector.shape_cast %146 : vector<1x16x128xf32> to vector<16x128xf32>
    %148 = vector.extract_strided_slice %147 {offsets = [0, 0], sizes = [16, 120], strides = [1, 1]} : vector<16x128xf32> to vector<16x120xf32>
    %149 = tpu.concatenate %132, %148 in 1 : vector<16x8xf32>, vector<16x120xf32> -> vector<16x128xf32>
    %150 = vector.extract_strided_slice %147 {offsets = [0, 8], sizes = [16, 120], strides = [1, 1]} : vector<16x128xf32> to vector<16x120xf32>
    %151 = tpu.concatenate %150, %132 in 1 : vector<16x120xf32>, vector<16x8xf32> -> vector<16x128xf32>
    %152 = arith.maximumf %145, %149 : vector<16x128xf32>
    %153 = arith.maximumf %152, %147 : vector<16x128xf32>
    %154 = arith.maximumf %153, %151 : vector<16x128xf32>
    %c2_132 = arith.constant 2 : index
    %c2_133 = arith.constant 2 : index
    %c0_134 = arith.constant 0 : index
    %155 = vector.load %arg20[%c2_132, %c2_133, %c0_134] : memref<5x18x128xf32, #tpu.memory_space<vmem>>, vector<1x16x128xf32>
    %156 = vector.shape_cast %155 : vector<1x16x128xf32> to vector<16x128xf32>
    %157 = tpu.iota {dimensions = array<i32: 0>} : vector<16x128xi32>
    %c14_i32 = arith.constant 14 : i32
    %158 = vector.broadcast %c14_i32 : i32 to vector<16x128xi32>
    %159 = arith.cmpi sle, %157, %158 : vector<16x128xi32>
    %cst_135 = arith.constant -1.000000e+30 : f32
    %160 = vector.broadcast %cst_135 : f32 to vector<16x128xf32>
    %161 = arith.select %159, %156, %160 : vector<16x128xi1>, vector<16x128xf32>
    %162 = vector.extract_strided_slice %161 {offsets = [0, 0], sizes = [16, 120], strides = [1, 1]} : vector<16x128xf32> to vector<16x120xf32>
    %163 = tpu.concatenate %132, %162 in 1 : vector<16x8xf32>, vector<16x120xf32> -> vector<16x128xf32>
    %164 = vector.extract_strided_slice %161 {offsets = [0, 8], sizes = [16, 120], strides = [1, 1]} : vector<16x128xf32> to vector<16x120xf32>
    %165 = tpu.concatenate %164, %132 in 1 : vector<16x120xf32>, vector<16x8xf32> -> vector<16x128xf32>
    %166 = arith.maximumf %154, %163 : vector<16x128xf32>
    %167 = arith.maximumf %166, %161 : vector<16x128xf32>
    %168 = arith.maximumf %167, %165 : vector<16x128xf32>
    %169 = arith.addf %131, %168 : vector<16x128xf32>
    %c3_136 = arith.constant 3 : index
    %c1_137 = arith.constant 1 : index
    %c0_138 = arith.constant 0 : index
    %170 = vector.load %arg20[%c3_136, %c1_137, %c0_138] : memref<5x18x128xf32, #tpu.memory_space<vmem>>, vector<1x16x128xf32>
    %171 = vector.shape_cast %170 : vector<1x16x128xf32> to vector<16x128xf32>
    %172 = vector.shape_cast %169 : vector<16x128xf32> to vector<1x16x128xf32>
    tpu.vector_store %arg20[%c3_136, %c1_137, %c0_138], %172 {strides = array<i32>} : memref<5x18x128xf32, #tpu.memory_space<vmem>>, vector<1x16x128xf32>,
    %c1_139 = arith.constant 1 : index
    %c0_140 = arith.constant 0 : index
    %c0_141 = arith.constant 0 : index
    %c0_142 = arith.constant 0 : index
    %173 = vector.load %arg19[%c1_139, %c0_140, %c0_141, %c0_142] : memref<3x1x16x128xf32, #tpu.memory_space<vmem>>, vector<1x1x16x128xf32>
    %174 = vector.shape_cast %173 : vector<1x1x16x128xf32> to vector<16x128xf32>
    %175 = vector.shape_cast %169 : vector<16x128xf32> to vector<1x1x16x128xf32>
    tpu.vector_store %arg19[%c1_139, %c0_140, %c0_141, %c0_142], %175 {strides = array<i32>} : memref<3x1x16x128xf32, #tpu.memory_space<vmem>>, vector<1x1x16x128xf32>,
    %c0_143 = arith.constant 0 : index
    %c1_144 = arith.constant 1 : index
    %c0_145 = arith.constant 0 : index
    %176 = vector.load %arg20[%c0_143, %c1_144, %c0_145] : memref<5x18x128xf32, #tpu.memory_space<vmem>>, vector<1x16x128xf32>
    %177 = vector.shape_cast %176 : vector<1x16x128xf32> to vector<16x128xf32>
    %c3_146 = arith.constant 3 : index
    %c0_147 = arith.constant 0 : index
    %c0_148 = arith.constant 0 : index
    %178 = vector.load %arg20[%c3_146, %c0_147, %c0_148] : memref<5x18x128xf32, #tpu.memory_space<vmem>>, vector<1x16x128xf32>
    %179 = vector.shape_cast %178 : vector<1x16x128xf32> to vector<16x128xf32>
    %cst_149 = arith.constant 0.000000e+00 : f32
    %180 = vector.broadcast %cst_149 : f32 to vector<16x128xf32>
    %181 = arith.maximumf %179, %180 : vector<16x128xf32>
    %c0_150 = arith.constant 0 : index
    %c0_151 = arith.constant 0 : index
    %182 = vector.load %arg16[%c0_150, %c0_151] : memref<128x128xf32, #tpu.memory_space<vmem>>, vector<128x128xf32>
    %cst_152 = arith.constant dense<0.000000e+00> : vector<16x128xf32>
    %183 = tpu.matmul %181, %182, %cst_152 {dimension_numbers = #tpu.dot_dimension_numbers<[1], [0], [0], [1], [0, 0, 1, 1], [], []>} : vector<16x128xf32>, vector<128x128xf32>, vector<16x128xf32> -> vector<16x128xf32>
    %c3_153 = arith.constant 3 : index
    %c1_154 = arith.constant 1 : index
    %c0_155 = arith.constant 0 : index
    %184 = vector.load %arg20[%c3_153, %c1_154, %c0_155] : memref<5x18x128xf32, #tpu.memory_space<vmem>>, vector<1x16x128xf32>
    %185 = vector.shape_cast %184 : vector<1x16x128xf32> to vector<16x128xf32>
    %cst_156 = arith.constant 0.000000e+00 : f32
    %186 = vector.broadcast %cst_156 : f32 to vector<16x128xf32>
    %187 = arith.maximumf %185, %186 : vector<16x128xf32>
    %c0_157 = arith.constant 0 : index
    %c0_158 = arith.constant 0 : index
    %188 = vector.load %arg17[%c0_157, %c0_158] : memref<128x128xf32, #tpu.memory_space<vmem>>, vector<128x128xf32>
    %cst_159 = arith.constant dense<0.000000e+00> : vector<16x128xf32>
    %189 = tpu.matmul %187, %188, %cst_159 {dimension_numbers = #tpu.dot_dimension_numbers<[1], [0], [0], [1], [0, 0, 1, 1], [], []>} : vector<16x128xf32>, vector<128x128xf32>, vector<16x128xf32> -> vector<16x128xf32>
    %190 = arith.addf %183, %189 : vector<16x128xf32>
    %c3_160 = arith.constant 3 : index
    %c2_161 = arith.constant 2 : index
    %c0_162 = arith.constant 0 : index
    %191 = vector.load %arg20[%c3_160, %c2_161, %c0_162] : memref<5x18x128xf32, #tpu.memory_space<vmem>>, vector<1x16x128xf32>
    %192 = vector.shape_cast %191 : vector<1x16x128xf32> to vector<16x128xf32>
    %cst_163 = arith.constant 0.000000e+00 : f32
    %193 = vector.broadcast %cst_163 : f32 to vector<16x128xf32>
    %194 = arith.maximumf %192, %193 : vector<16x128xf32>
    %c0_164 = arith.constant 0 : index
    %c0_165 = arith.constant 0 : index
    %195 = vector.load %arg18[%c0_164, %c0_165] : memref<128x128xf32, #tpu.memory_space<vmem>>, vector<128x128xf32>
    %cst_166 = arith.constant dense<0.000000e+00> : vector<16x128xf32>
    %196 = tpu.matmul %194, %195, %cst_166 {dimension_numbers = #tpu.dot_dimension_numbers<[1], [0], [0], [1], [0, 0, 1, 1], [], []>} : vector<16x128xf32>, vector<128x128xf32>, vector<16x128xf32> -> vector<16x128xf32>
    %197 = arith.addf %190, %196 : vector<16x128xf32>
    %198 = arith.addf %177, %197 : vector<16x128xf32>
    %c4_167 = arith.constant 4 : index
    %c1_168 = arith.constant 1 : index
    %c0_169 = arith.constant 0 : index
    %199 = vector.load %arg20[%c4_167, %c1_168, %c0_169] : memref<5x18x128xf32, #tpu.memory_space<vmem>>, vector<1x16x128xf32>
    %200 = vector.shape_cast %199 : vector<1x16x128xf32> to vector<16x128xf32>
    %201 = vector.shape_cast %198 : vector<16x128xf32> to vector<1x16x128xf32>
    tpu.vector_store %arg20[%c4_167, %c1_168, %c0_169], %201 {strides = array<i32>} : memref<5x18x128xf32, #tpu.memory_space<vmem>>, vector<1x16x128xf32>,
    %c2_170 = arith.constant 2 : index
    %c0_171 = arith.constant 0 : index
    %c0_172 = arith.constant 0 : index
    %c0_173 = arith.constant 0 : index
    %202 = vector.load %arg19[%c2_170, %c0_171, %c0_172, %c0_173] : memref<3x1x16x128xf32, #tpu.memory_space<vmem>>, vector<1x1x16x128xf32>
    %203 = vector.shape_cast %202 : vector<1x1x16x128xf32> to vector<16x128xf32>
    %204 = vector.shape_cast %198 : vector<16x128xf32> to vector<1x1x16x128xf32>
    tpu.vector_store %arg19[%c2_170, %c0_171, %c0_172, %c0_173], %204 {strides = array<i32>} : memref<3x1x16x128xf32, #tpu.memory_space<vmem>>, vector<1x1x16x128xf32>,
    return
  }
  func.func @transform_0(%arg0: i32) -> (i32, i32, i32) {
    %c0_i32 = arith.constant 0 : i32
    %c0_i32_0 = arith.constant 0 : i32
    %c0_i32_1 = arith.constant 0 : i32
    return %arg0, %c0_i32, %c0_i32_0 : i32, i32, i32
  }
  func.func @transform_1(%arg0: i32) -> (i32, i32, i32) {
    %c0_i32 = arith.constant 0 : i32
    %c0_i32_0 = arith.constant 0 : i32
    %c0_i32_1 = arith.constant 0 : i32
    return %arg0, %c0_i32, %c0_i32_0 : i32, i32, i32
  }
  func.func @transform_2(%arg0: i32) -> (i32, i32) {
    %c0_i32 = arith.constant 0 : i32
    %c0_i32_0 = arith.constant 0 : i32
    %c0_i32_1 = arith.constant 0 : i32
    return %c0_i32, %c0_i32_0 : i32, i32
  }
  func.func @transform_3(%arg0: i32) -> (i32, i32) {
    %c0_i32 = arith.constant 0 : i32
    %c0_i32_0 = arith.constant 0 : i32
    %c0_i32_1 = arith.constant 0 : i32
    return %c0_i32, %c0_i32_0 : i32, i32
  }
  func.func @transform_4(%arg0: i32) -> (i32, i32) {
    %c0_i32 = arith.constant 0 : i32
    %c0_i32_0 = arith.constant 0 : i32
    %c0_i32_1 = arith.constant 0 : i32
    return %c0_i32, %c0_i32_0 : i32, i32
  }
  func.func @transform_5(%arg0: i32) -> (i32, i32) {
    %c0_i32 = arith.constant 0 : i32
    %c0_i32_0 = arith.constant 0 : i32
    %c0_i32_1 = arith.constant 0 : i32
    return %c0_i32, %c0_i32_0 : i32, i32
  }
  func.func @transform_6(%arg0: i32) -> (i32, i32) {
    %c0_i32 = arith.constant 0 : i32
    %c0_i32_0 = arith.constant 0 : i32
    %c0_i32_1 = arith.constant 0 : i32
    return %c0_i32, %c0_i32_0 : i32, i32
  }
  func.func @transform_7(%arg0: i32) -> (i32, i32) {
    %c0_i32 = arith.constant 0 : i32
    %c0_i32_0 = arith.constant 0 : i32
    %c0_i32_1 = arith.constant 0 : i32
    return %c0_i32, %c0_i32_0 : i32, i32
  }
  func.func @transform_8(%arg0: i32) -> (i32, i32) {
    %c0_i32 = arith.constant 0 : i32
    %c0_i32_0 = arith.constant 0 : i32
    %c0_i32_1 = arith.constant 0 : i32
    return %c0_i32, %c0_i32_0 : i32, i32
  }
  func.func @transform_9(%arg0: i32) -> (i32, i32) {
    %c0_i32 = arith.constant 0 : i32
    %c0_i32_0 = arith.constant 0 : i32
    %c0_i32_1 = arith.constant 0 : i32
    return %c0_i32, %c0_i32_0 : i32, i32
  }
  func.func @transform_10(%arg0: i32) -> (i32, i32) {
    %c0_i32 = arith.constant 0 : i32
    %c0_i32_0 = arith.constant 0 : i32
    %c0_i32_1 = arith.constant 0 : i32
    return %c0_i32, %c0_i32_0 : i32, i32
  }
  func.func @transform_11(%arg0: i32) -> (i32, i32) {
    %c0_i32 = arith.constant 0 : i32
    %c0_i32_0 = arith.constant 0 : i32
    %c0_i32_1 = arith.constant 0 : i32
    return %c0_i32, %c0_i32_0 : i32, i32
  }
  func.func @transform_12(%arg0: i32) -> (i32, i32) {
    %c0_i32 = arith.constant 0 : i32
    %c0_i32_0 = arith.constant 0 : i32
    %c0_i32_1 = arith.constant 0 : i32
    return %c0_i32, %c0_i32_0 : i32, i32
  }
  func.func @transform_13(%arg0: i32) -> (i32, i32) {
    %c0_i32 = arith.constant 0 : i32
    %c0_i32_0 = arith.constant 0 : i32
    %c0_i32_1 = arith.constant 0 : i32
    return %c0_i32, %c0_i32_0 : i32, i32
  }
  func.func @transform_14(%arg0: i32) -> (i32, i32) {
    %c0_i32 = arith.constant 0 : i32
    %c0_i32_0 = arith.constant 0 : i32
    %c0_i32_1 = arith.constant 0 : i32
    return %c0_i32, %c0_i32_0 : i32, i32
  }
  func.func @transform_15(%arg0: i32) -> (i32, i32) {
    %c0_i32 = arith.constant 0 : i32
    %c0_i32_0 = arith.constant 0 : i32
    %c0_i32_1 = arith.constant 0 : i32
    return %c0_i32, %c0_i32_0 : i32, i32
  }
  func.func @transform_16(%arg0: i32) -> (i32, i32) {
    %c0_i32 = arith.constant 0 : i32
    %c0_i32_0 = arith.constant 0 : i32
    %c0_i32_1 = arith.constant 0 : i32
    return %c0_i32, %c0_i32_0 : i32, i32
  }
  func.func @transform_17(%arg0: i32) -> (i32, i32) {
    %c0_i32 = arith.constant 0 : i32
    %c0_i32_0 = arith.constant 0 : i32
    %c0_i32_1 = arith.constant 0 : i32
    return %c0_i32, %c0_i32_0 : i32, i32
  }
  func.func @transform_18(%arg0: i32) -> (i32, i32, i32, i32) {
    %c0_i32 = arith.constant 0 : i32
    %c0_i32_0 = arith.constant 0 : i32
    %c0_i32_1 = arith.constant 0 : i32
    %c0_i32_2 = arith.constant 0 : i32
    return %c0_i32, %arg0, %c0_i32_0, %c0_i32_1 : i32, i32, i32, i32
  }
}

</mosaic_0001>

<bundles_post_ra>
// kernel: tpu_custom_call.1
= control target key start
LH: loop header
LB: loop body
LE: loop exit
PB: predicated region body
PF: predicated region fallthrough
CT: control target
= control target key end

     0   :  { %s3608_s0 = inlined_call_operand.hbm [shape: f32[2,16,96], index: 0, kind: input, shape index: {}]   ;;  %s3609_s1 = inlined_call_operand.vmem [shape: f32[2,6,60], index: 1, kind: input, shape index: {}]   ;;  %s3610_s2 = inlined_call_operand.hbm [shape: f32[96,128], index: 2, kind: input, shape index: {}]   ;;  %s3611_s3 = inlined_call_operand.hbm [shape: f32[60,192], index: 3, kind: input, shape index: {}]   ;;  %s3612_s4 = inlined_call_operand.hbm [shape: f32[192,96], index: 4, kind: input, shape index: {}]   ;;  %s3613_s5 = inlined_call_operand.hbm [shape: f32[192,96], index: 5, kind: input, shape index: {}]   ;;  %s3614_s6 = inlined_call_operand.hbm [shape: f32[192,96], index: 6, kind: input, shape index: {}]   ;;  %s3615_s7 = inlined_call_operand.hbm [shape: f32[128,128], index: 7, kind: input, shape index: {}]   ;;  %s3616_s8 = inlined_call_operand.hbm [shape: f32[128,128], index: 8, kind: input, shape index: {}]   ;;  %s3617_s9 = inlined_call_operand.hbm [shape: f32[128,128], index: 9, kind: input, shape index: {}]   ;;  %s3618_s10 = inlined_call_operand.vmem [shape: f32[16,12], index: 10, kind: input, shape index: {}]   ;;  %s3619_s11 = inlined_call_operand.hbm [shape: f32[96,128], index: 11, kind: input, shape index: {}]   ;;  %s3620_s12 = inlined_call_operand.hbm [shape: f32[96,96], index: 12, kind: input, shape index: {}]   ;;  %s3621_s13 = inlined_call_operand.hbm [shape: f32[96,96], index: 13, kind: input, shape index: {}]   ;;  %s3622_s14 = inlined_call_operand.hbm [shape: f32[96,96], index: 14, kind: input, shape index: {}]   ;;  %s3623_s15 = inlined_call_operand.hbm [shape: f32[128,128], index: 15, kind: input, shape index: {}]   ;;  %s3624_s16 = inlined_call_operand.hbm [shape: f32[128,128], index: 16, kind: input, shape index: {}]   ;;  %s3625_s17 = inlined_call_operand.hbm [shape: f32[128,128], index: 17, kind: input, shape index: {}]   ;;  %s3626_s18 = inlined_call_operand.hbm [shape: f32[3,2,16,128], index: 18, kind: output, shape index: {}]  }
   0x1   :  { %3632 = sst [smem:[#allocation45_spill]] %s3608_s0 }
   0x2   :  { %3633 = sst [smem:[#allocation46_spill]] %s3609_s1 }
   0x3   :  { %3634 = sst [smem:[#allocation47_spill]] %s3610_s2 }
   0x4   :  { %3635 = sst [smem:[#allocation48_spill]] %s3611_s3 }
   0x5   :  { %3636 = sst [smem:[#allocation49_spill]] %s3612_s4 }
   0x6   :  { %3637 = sst [smem:[#allocation50_spill]] %s3613_s5 }
   0x7   :  { %3638 = sst [smem:[#allocation51_spill]] %s3614_s6 }
   0x8   :  { %3639 = sst [smem:[#allocation52_spill]] %s3615_s7 }
   0x9   :  { %3640 = sst [smem:[#allocation53_spill]] %s3616_s8 }
   0xa   :  { %3641 = sst [smem:[#allocation54_spill]] %s3617_s9 }
   0xb   :  { %3642 = sst [smem:[#allocation55_spill]] %s3618_s10 }
   0xc   :  { %3643 = sst [smem:[#allocation56_spill]] %s3626_s18 }
   0xd   :  { %23 = vsyncpa [#allocation5], 0 }
   0xe   :  { %25 = vsyncpa [#allocation5 + $0x1], 0 }
   0xf   :  { %26 = vsyncpa [#allocation8], 0 }
  0x10   :  { %27 = vsyncpa [#allocation11], 0 }
  0x11   :  { %28 = vsyncpa [#allocation14], 0 }
  0x12   :  { %29 = vsyncpa [#allocation17], 0 }
  0x13   :  { %30 = vsyncpa [#allocation20], 0 }
  0x14   :  { %31 = vsyncpa [#allocation23], 0 }
  0x15   :  { %32 = vsyncpa [#allocation26], 0 }
  0x16   :  { %33 = vsyncpa [#allocation29], 0 }
  0x17   :  { %34 = vsyncpa [#allocation6], 0 }
  0x18   :  { %36 = vsyncpa [#allocation6 + $0x1], 0  ;;  %s3121_s27 = smov 0   ;;  %s3123_s28 = smov 0  }
  0x19   :  { %s3125_s29 = smov 0   ;;  %s3127_s30 = smov 0  }
  0x1a LB: > { %3644 = sst [smem:[#allocation43_spill]] %s2983_s27  ;;  %s3145_s21 = sadd.s32 4294967295, %s2995_s30   ;;  %s2995_s30 = sphi %s3127_s30, %s3673_s30   ;;  %s2991_s29 = sphi %s3125_s29, %s3672_s29   ;;  %s2987_s28 = sphi %s3123_s28, %s3671_s28   ;;  %s2983_s27 = sphi %s3121_s27, %s3670_s27  }
  0x1b   : > { %s3645_s1 = sld [smem:[#allocation47_spill]]  ;;  %p2154_p0 = scmp.ge.s32.totalorder %s2995_s30, 1 }
  0x1c   : > { %p63_p1 = scmp.eq.s32.totalorder %s3145_s21, 0  ;;  %p461_p2 = scmp.lt.s32.totalorder %s2995_s30, 3 }
  0x1d   : > { %s2997_s2 = smov [#allocation7]   ;;  %s3648_s4 = sld [smem:[#allocation49_spill]] }
  0x1e   : > { %p3150_p3 = pnand %p2154_p0, %p461_p2  ;;  %s474_s23 = sshll.u32 %s2997_s2, 4  ;;  %s475_s23 = int_to_ptr.vmem [resolvable:$true] %s474_s23 }
  0x1f   : > { %s3650_s6 = sld [smem:[#allocation51_spill]]  ;;  %s2998_s18 = smov [#allocation10]  }
  0x20   : > { %s3646_s22 = scalar_select %p3150_p3, 1, 0 }
  0x21   : > { %s472_s20 = sshll.u32 %s3645_s1, 4  ;;  %p2298_p4 = pneg %p3150_p3  ;;  %s473_s20 = int_to_ptr.hbm [resolvable:$true] %s472_s20 }
  0x22   : > { %3647 = sst [smem:[#allocation44_spill]] %s3646_s22  ;;  %s502_s10 = sshll.u32 %s2998_s18, 4  ;;  %s503_s10 = int_to_ptr.vmem [resolvable:$true] %s502_s10 }
  0x23   : > { %s500_s26 = sshll.u32 %s3648_s4, 4  ;;  %p3162_p6 = pnand %p2298_p4, %p63_p1  ;;  %s501_s26 = int_to_ptr.hbm [resolvable:$true] %s500_s26 }
  0x24   : > { %s3630_s22 = smov 128   ;;  %s3631_s27 = smov 8  }
  0x25   : > { %s528_s2 = sshll.u32 %s3650_s6, 4  ;;  %s3651_s8 = sld [smem:[#allocation53_spill]]  ;;  %s529_s2 = int_to_ptr.hbm [resolvable:$true] %s528_s2 }
  0x26   : > { %2301 = dma.hbm_to_vmem [thread:$0]  (!%p3162_p6), %s473_s20, 1536, %s475_s23, [#allocation8], %s3630_s22, %s3630_s22, %s3631_s27  }
  0x27   : > { %2307 = dma.hbm_to_vmem [thread:$0]  (!%p3162_p6), %s501_s26, 3072, %s503_s10, [#allocation11], %s3630_s22, %s3630_s22, %s3631_s27  }
  0x28   : > { %s3001_s18 = smov [#allocation13]   ;;  %s3002_s20 = smov [#allocation16]  }
  0x29   : > { %s530_s1 = sshll.u32 %s3001_s18, 4  ;;  %s558_s23 = sshll.u32 %s3002_s20, 4  ;;  %s531_s1 = int_to_ptr.vmem [resolvable:$true] %s530_s1  ;;  %s559_s23 = int_to_ptr.vmem [resolvable:$true] %s558_s23 }
  0x2a   : > { %2313 = dma.hbm_to_vmem [thread:$0]  (!%p3162_p6), %s529_s2, 3072, %s531_s1, [#allocation14], %s3630_s22, %s3630_s22, %s3631_s27  }
  0x2b   : > { %s556_s19 = sshll.u32 %s3651_s8, 4  ;;  %s587_s10 = sshll.u32 %s3619_s11, 4  ;;  %s557_s19 = int_to_ptr.hbm [resolvable:$true] %s556_s19  ;;  %s588_s10 = int_to_ptr.hbm [resolvable:$true] %s587_s10 }
  0x2c   : > { %2319 = dma.hbm_to_vmem [thread:$0]  (!%p3162_p6), %s557_s19, 2048, %s559_s23, [#allocation17], %s3630_s22, %s3630_s22, %s3631_s27  }
  0x2d   : > { %s615_s25 = sshll.u32 %s3621_s13, 4  ;;  %s3003_s18 = smov [#allocation19]   ;;  %s616_s25 = int_to_ptr.hbm [resolvable:$true] %s615_s25 }
  0x2e   : > { %s589_s2 = sshll.u32 %s3003_s18, 4  ;;  %s3004_s4 = smov [#allocation22]   ;;  %s590_s2 = int_to_ptr.vmem [resolvable:$true] %s589_s2 }
  0x2f   : > { %2325 = dma.hbm_to_vmem [thread:$0]  (!%p3162_p6), %s588_s10, 1536, %s590_s2, [#allocation20], %s3630_s22, %s3630_s22, %s3631_s27  }
  0x30   : > { %s617_s6 = sshll.u32 %s3004_s4, 4  ;;  %s643_s19 = sshll.u32 %s3623_s15, 4  ;;  %s618_s6 = int_to_ptr.vmem [resolvable:$true] %s617_s6  ;;  %s644_s19 = int_to_ptr.hbm [resolvable:$true] %s643_s19 }
  0x31   : > { %2331 = dma.hbm_to_vmem [thread:$0]  (!%p3162_p6), %s616_s25, 1536, %s618_s6, [#allocation23], %s3630_s22, %s3630_s22, %s3631_s27  }
  0x32   : > { %s3652_s3 = sld [smem:[#allocation48_spill]]  ;;  %s3005_s18 = smov [#allocation25]  }
  0x33   : > { %s645_s10 = sshll.u32 %s3005_s18, 4  ;;  %s3006_s2 = smov [#allocation9]   ;;  %s646_s10 = int_to_ptr.vmem [resolvable:$true] %s645_s10 }
  0x34   : > { %2337 = dma.hbm_to_vmem [thread:$0]  (!%p3162_p6), %s644_s19, 2048, %s646_s10, [#allocation26], %s3630_s22, %s3630_s22, %s3631_s27  }
  0x35   : > { %s488_s4 = sshll.u32 %s3006_s2, 4  ;;  %s3007_s1 = smov 256   ;;  %s489_s4 = int_to_ptr.vmem [resolvable:$true] %s488_s4 }
  0x36   : > { %s3008_s25 = smov 16   ;;  %s3653_s5 = sld [smem:[#allocation50_spill]] }
  0x37   : > { %s3009_s26 = smov [#allocation12]   ;;  %s3654_s7 = sld [smem:[#allocation52_spill]] }
  0x38   : > { %s486_s24 = sshll.u32 %s3652_s3, 4  ;;  %s516_s18 = sshll.u32 %s3009_s26, 4  ;;  %s487_s24 = int_to_ptr.hbm [resolvable:$true] %s486_s24  ;;  %s517_s18 = int_to_ptr.vmem [resolvable:$true] %s516_s18 }
  0x39   : > { %2304 = dma.hbm_to_vmem [thread:$0]  (!%p3162_p6), %s487_s24, 2048, %s489_s4, [#allocation8], %s3007_s1, %s3007_s1, %s3008_s25  }
  0x3a   : > { %s3010_s24 = smov [#allocation15]   ;;  %s3655_s9 = sld [smem:[#allocation54_spill]] }
  0x3b   : > { %s544_s10 = sshll.u32 %s3010_s24, 4  ;;  %s601_s25 = sshll.u32 %s3620_s12, 4  ;;  %s545_s10 = int_to_ptr.vmem [resolvable:$true] %s544_s10  ;;  %s602_s25 = int_to_ptr.hbm [resolvable:$true] %s601_s25 }
  0x3c   : > { %s514_s23 = sshll.u32 %s3653_s5, 4  ;;  %s3011_s6 = smov [#allocation18]   ;;  %s515_s23 = int_to_ptr.hbm [resolvable:$true] %s514_s23 }
  0x3d   : > { %s542_s19 = sshll.u32 %s3654_s7, 4  ;;  %s572_s20 = sshll.u32 %s3011_s6, 4  ;;  %s543_s19 = int_to_ptr.hbm [resolvable:$true] %s542_s19  ;;  %s573_s20 = int_to_ptr.vmem [resolvable:$true] %s572_s20 }
  0x3e   : > { %2310 = dma.hbm_to_vmem [thread:$0]  (!%p3162_p6), %s515_s23, 3072, %s517_s18, [#allocation11], %s3630_s22, %s3630_s22, %s3631_s27  }
  0x3f   : > { %2316 = dma.hbm_to_vmem [thread:$0]  (!%p3162_p6), %s543_s19, 2048, %s545_s10, [#allocation14], %s3630_s22, %s3630_s22, %s3631_s27  }
  0x40   : > { %s570_s1 = sshll.u32 %s3655_s9, 4  ;;  %s3012_s23 = smov [#allocation21]   ;;  %s571_s1 = int_to_ptr.hbm [resolvable:$true] %s570_s1 }
  0x41   : > { %2322 = dma.hbm_to_vmem [thread:$0]  (!%p3162_p6), %s571_s1, 2048, %s573_s20, [#allocation17], %s3630_s22, %s3630_s22, %s3631_s27  }
  0x42   : > { %s603_s26 = sshll.u32 %s3012_s23, 4  ;;  %s629_s19 = sshll.u32 %s3622_s14, 4  ;;  %s604_s26 = int_to_ptr.vmem [resolvable:$true] %s603_s26  ;;  %s630_s19 = int_to_ptr.hbm [resolvable:$true] %s629_s19 }
  0x43   : > { %2328 = dma.hbm_to_vmem [thread:$0]  (!%p3162_p6), %s602_s25, 1536, %s604_s26, [#allocation20], %s3630_s22, %s3630_s22, %s3631_s27  }
  0x44   : > { %s657_s4 = sshll.u32 %s3624_s16, 4  ;;  %s3013_s1 = smov [#allocation24]   ;;  %s658_s4 = int_to_ptr.hbm [resolvable:$true] %s657_s4 }
  0x45   : > { %s631_s3 = sshll.u32 %s3013_s1, 4  ;;  %s3014_s8 = smov [#allocation27]   ;;  %s632_s3 = int_to_ptr.vmem [resolvable:$true] %s631_s3 }
  0x46   : > { %2334 = dma.hbm_to_vmem [thread:$0]  (!%p3162_p6), %s630_s19, 1536, %s632_s3, [#allocation23], %s3630_s22, %s3630_s22, %s3631_s27  }
  0x47   : > { %s659_s25 = sshll.u32 %s3014_s8, 4  ;;  %s3656_s23 = sld [smem:[#allocation43_spill]]  ;;  %s660_s25 = int_to_ptr.vmem [resolvable:$true] %s659_s25 }
  0x48   : > { %s671_s26 = sshll.u32 %s3625_s17, 4  ;;  %s3015_s18 = smov [#allocation28]   ;;  %s672_s26 = int_to_ptr.hbm [resolvable:$true] %s671_s26 }
  0x49   : > { %2340 = dma.hbm_to_vmem [thread:$0]  (!%p3162_p6), %s658_s4, 2048, %s660_s25, [#allocation26], %s3630_s22, %s3630_s22, %s3631_s27  }
  0x4a   : > { %s673_s24 = sshll.u32 %s3015_s18, 4  ;;  %s2153_s19 = sadd.s32 4294967294, %s2995_s30   ;;  %s674_s24 = int_to_ptr.vmem [resolvable:$true] %s673_s24 }
  0x4b   : > { %2343 = dma.hbm_to_vmem [thread:$0]  (!%p3162_p6), %s672_s26, 2048, %s674_s24, [#allocation29], %s3630_s22, %s3630_s22, %s3631_s27  }
  0x4c   : > { %s3279_s10 = sadd.s32 1, %s2995_s30   ;;  %s49_s2 = sadd.s32 1, %s2991_s29 }
  0x4d   : > { %s46_s1 = ssub.s32 %s2995_s30, %s3279_s10  ;;  %p56_p7 = scmp.ne.s32.totalorder %s2991_s29, %s2987_s28 }
  0x4e   : > { %p47_p8 = scmp.eq.s32.totalorder %s46_s1, 0  ;;  %p57_p9 = scmp.eq.s32.totalorder %s2995_s30, 0 }
  0x4f   : > { %p62_p10 = scmp.ne.s32.totalorder %s2987_s28, %s3656_s23  ;;  %p448_p11 = scmp.eq.s32.totalorder %s3145_s21, 1 }
  0x50   : > { %s3291_s4 = scalar_select %p47_p8, %s2991_s29, %s49_s2  }
  0x51   : > { %p3295_p12 = por %p63_p1, %p62_p10  ;;  %p3299_p13 = por %p448_p11, %p56_p7 }
  0x52   : > { %p454_p0 = scmp.eq.s32.totalorder %s2153_s19, 1  ;;  %p58_p2 = por %p57_p9, %p56_p7 }
  0x53   : > { %s687_s8 = sand.u32 1, %s2991_s29   ;;  %p2367_p6 = scmp.lt.s32.totalorder %s2995_s30, 2 }
  0x54   : > { %p3304_p4 = por %p454_p0, %p62_p10  ;;  %s2171_s6 = sshll.u32 %s687_s8, 4 }
  0x55   : > { %s2225_s20 = sshll.u32 %s2995_s30, 4  ;;  %s3660_s18 = sld [smem:[#allocation45_spill]] }
  0x56   : > { %s691_s1 = scalar_lea.vmem [#allocation4], %s2171_s6  ;;  %p3313_p8 = pnand %p2367_p6, %p58_p2 }
  0x57   : > { %s699_s22 = sshll.u32 %s691_s1, 4  ;;  %s688_s27 = scalar_lea.sflag [#allocation5], %s687_s8  ;;  %s700_s22 = int_to_ptr.vmem [resolvable:$true] %s699_s22 }
  0x58   : > { %p2899_p9 = pneg %p3313_p8 }
  0x5b   : > { %s696_s24 = scalar_lea.hbm %s3660_s18, %s2225_s20  ;;  %s2902_s6 = scalar_lea.hbm %s3660_s18, 32 }
  0x5c   : > { %s697_s2 = sshll.u32 %s696_s24, 4  ;;  %s698_s2 = int_to_ptr.hbm [resolvable:$true] %s697_s2 }
  0x5d   : > { %s2895_s5 = sshra.s32 %s698_s2, 4  ;;  %s2896_s5 = int_to_ptr.hbm [resolvable:$true] %s2895_s5 }
  0x5e   : > { %s2897_s7 = scalar_lea.hbm %s2896_s5, 16  ;;  %p2903_p0 = scmp.lt.s32.totalorder %s2896_s5, %s3660_s18 }
  0x5f   : > { %p2898_p7 = scmp.ne.s32.totalorder %s2896_s5, %s2897_s7  ;;  %p2904_p2 = scmp.lt.s32.totalorder %s2902_s6, %s2897_s7 }
  0x61   : > { %p2900_p10 = pnand %p2899_p9, %p2898_p7  ;;  %p2905_p6 = por %p2904_p2, %p2903_p0 }
  0x63   : > { %p2901_p11 = pneg %p2900_p10 }
  0x65   : > { %p2906_p5 = pnand %p2905_p6, %p2901_p11 }
  0x67   : > { %2909 = shalt.err (!%p2906_p5)
}
  0x68   : > { %s3662_s8 = smov 8   ;;  %s3663_s1 = smov 128  }
  0x69   : > { %2347 = dma.hbm_to_vmem [thread:$0]  (!%p3313_p8), %s698_s2, 256, %s700_s22, %s688_s27, %s3663_s1, %s3663_s1, %s3662_s8  }
  0x6a   : > { %718 = sbr.rel (%p3150_p3) target bundleno = 1169 (0x491), region = 92  ;;  %s3333_s20 = sand.u32 (!%p3150_p3), 1, %s2987_s28  }
  0x6b   : > { %s2175_s5 = sshll.u32 (!%p3150_p3), %s3333_s20, 4  ;;  %s721_s7 = scalar_lea.sflag (!%p3150_p3), [#allocation5], %s3333_s20 }
  0x6c   : > { %s3337_s23 = scalar_lea.vmem (!%p3150_p3), [#allocation4], %s2175_s5 }
  0x6f   : > { %2942 = dma.done.wait (%p3295_p12), %s721_s7, 256  }
  0x70   : > { %2944 = vsyncadd (%p3295_p12), %s721_s7, 4294967040 }
  0x71   : > { %2946 = dma.done.wait (%p63_p1), [#allocation8], 3584  }
  0x72   : > { %2948 = vsyncadd (%p63_p1), [#allocation8], 4294963712 }
  0x73   : > { %2950 = dma.done.wait (%p63_p1), [#allocation11], 6144  }
  0x74   : > { %2952 = vsyncadd (%p63_p1), [#allocation11], 4294961152 }
  0x75   : > { %2954 = dma.done.wait (%p63_p1), [#allocation14], 5120  }
  0x76   : > { %2956 = vsyncadd (%p63_p1), [#allocation14], 4294962176 }
  0x77   : > { %2958 = dma.done.wait (%p63_p1), [#allocation17], 4096  }
  0x78   : > { %2960 = vsyncadd (%p63_p1), [#allocation17], 4294963200 }
  0x79   : > { %2962 = dma.done.wait (%p63_p1), [#allocation20], 3072  }
  0x7a   : > { %2964 = vsyncadd (%p63_p1), [#allocation20], 4294964224 }
  0x7b   : > { %2966 = dma.done.wait (%p63_p1), [#allocation23], 3072  }
  0x7c   : > { %2968 = vsyncadd (%p63_p1), [#allocation23], 4294964224 }
  0x7d   : > { %2970 = dma.done.wait (%p63_p1), [#allocation26], 4096  }
  0x7e   : > { %2972 = vsyncadd (%p63_p1), [#allocation26], 4294963200 }
  0x7f   : > { %2974 = dma.done.wait (%p63_p1), [#allocation29], 2048  }
  0x80   : > { %2976 = vsyncadd (%p63_p1), [#allocation29], 4294965248  ;;  %v3016_v0 = vmov 0.0   ;;  %p857_p3 = scmp.lt.s32.totalorder %s3145_s21, 1  ;;  %vm949_vm0 = vcmask 1043456   ;;  %v941_v3 = vld [vmem:[#allocation9 + $0x60] sm:$0xff] }
  0x81   : > { %861 = vst [vmem:[#allocation2] sm:$0xff] %v3016_v0  ;;  %v943_v1 = vld [vmem:[#allocation9 + $0x70] sm:$0xf]  ;;  %v944_v2 = vld [vmem:[#allocation9 + $0x78] sm:$0xf]  ;;  %v942_v4 = vld [vmem:[#allocation9 + $0x68] sm:$0xff] }
  0x82   : > { %862 = vst [vmem:[#allocation2 + $0x8] sm:$0xff] %v3016_v0  ;;  %s858_s9 = scalar_select %p857_p3, %s3145_s21, 1  ;;  %2194 = vmatpush.msk.msra.mxu1 %vm949_vm0, %v943_v1  ;;  %2196 = vmatpush.msk.msra.mxu2 %vm949_vm0, %v944_v2  ;;  %v939_v5 = vld [vmem:[#allocation9 + $0x50] sm:$0xff]  ;;  %v940_v6 = vld [vmem:[#allocation9 + $0x58] sm:$0xff]  ;;  %v937_v7 = vld [vmem:[#allocation9 + $0x40] sm:$0xff]  ;;  %vm945_vm1 = vcmask 490496  }
  0x83   : > { %863 = vst [vmem:[#allocation2 + $0x10] sm:$0x3] %v3016_v0  ;;  %v938_v8 = vld [vmem:[#allocation9 + $0x48] sm:$0xff]  ;;  %v1022_v9 = vld [vmem:[#allocation10 + $0x78] sm:$0xff]  ;;  %v935_v10 = vld [vmem:[#allocation9 + $0x30] sm:$0xff]  ;;  %s3665_s2 = sld [smem:[#allocation46_spill]] }
  0x84   : > { %864 = vst [vmem:[#allocation2 + $0x18] sm:$0xff] %v3016_v0  ;;  %965 = vmatpush.msra.mxu1 %v941_v3  ;;  %985 = vmatpush.msra.mxu2 %v942_v4  ;;  %s2191_s27 = sshll.u32 %s858_s9, 3  ;;  %v936_v11 = vld [vmem:[#allocation9 + $0x38] sm:$0xff]  ;;  %v1021_v12 = vld [vmem:[#allocation10 + $0x70] sm:$0xff]  ;;  %v1020_v13 = vld [vmem:[#allocation10 + $0x68] sm:$0xff]  ;;  %vm877_vm2 = vcmask 523264  }
  0x85   : > { %865 = vst [vmem:[#allocation2 + $0x20] sm:$0xff] %v3016_v0  ;;  %1034 = vmatpush.msra.mxu3 %v1022_v9  ;;  %v933_v14 = vld [vmem:[#allocation9 + $0x20] sm:$0xff]  ;;  %v934_v15 = vld [vmem:[#allocation9 + $0x28] sm:$0xff]  ;;  %v931_v18 = vld [vmem:[#allocation9 + $0x10] sm:$0xff]  ;;  %vm895_vm3 = vcmask 785408   ;;  %vm997_vm4 = vcmask 521216  }
  0x86   : > { %867 = vst [vmem:[#allocation2 + $0x30] sm:$0xff] %v3016_v0  ;;  %966 = vmatpush.msra.mxu1 %v939_v5  ;;  %986 = vmatpush.msra.mxu2 %v940_v6  ;;  %v1019_v17 = vld [vmem:[#allocation10 + $0x60] sm:$0xff]  ;;  %v932_v19 = vld [vmem:[#allocation9 + $0x18] sm:$0xff]  ;;  %v893_v22 = vld [vmem:[#allocation7 + $0x50] sm:$0xff]  ;;  %vm1210_vm5 = vcmask 778240   ;;  %vm1213_vm6 = vcmask 779265  }
  0x87   : > { %868 = vst [vmem:[#allocation2 + $0x38] sm:$0xff] %v3016_v0  ;;  %1035 = vmatpush.msra.mxu3 %v1021_v12  ;;  %v894_v20 = vld [vmem:[#allocation7 + $0x58] sm:$0xff]  ;;  %v929_v23 = vld [vmem:[#allocation9] sm:$0xff]  ;;  %v930_v24 = vld [vmem:[#allocation9 + $0x8] sm:$0xff]  ;;  %vm1216_vm7 = vcmask 780290   ;;  %vm1219_vm8 = vcmask 781315  }
  0x88   : > { %869 = vst [vmem:[#allocation2 + $0x40] sm:$0x3] %v3016_v0  ;;  %967 = vmatpush.msra.mxu1 %v937_v7  ;;  %987 = vmatpush.msra.mxu2 %v938_v8  ;;  %v1018_v21 = vld [vmem:[#allocation10 + $0x58] sm:$0xff]  ;;  %v1017_v28 = vld [vmem:[#allocation10 + $0x50] sm:$0xff]  ;;  %v892_v29 = vld [vmem:[#allocation7 + $0x48] sm:$0xff]  ;;  %vm1222_vm9 = vcmask 782340  }
  0x89   : > { %870 = vst [vmem:[#allocation2 + $0x48] sm:$0xff] %v3016_v0  ;;  %s860_s19 = scalar_lea.vmem %s3665_s2, %s2191_s27  ;;  %1036 = vmatpush.msra.mxu3 %v1020_v13  ;;  %906 = vmatpush.msra.mxu0 %v894_v20  ;;  %v1113_v26 = vld [vmem:[#allocation13 + $0x78] sm:$0xff]  ;;  %v1112_v30 = vld [vmem:[#allocation13 + $0x70] sm:$0xff]  ;;  %v1016_v32 = vld [vmem:[#allocation10 + $0x48] sm:$0xff]  ;;  %vm1225_vm10 = vcmask 783365   ;;  %s3666_s24 = sld [smem:[#allocation55_spill]] }
  0x8a   : > { %871 = vst [vmem:[#allocation2 + $0x50] sm:$0xff] %v3016_v0  ;;  %968 = vmatpush.msra.mxu1 %v935_v10  ;;  %988 = vmatpush.msra.mxu2 %v936_v11  ;;  %v927_v16 = vld [vmem:[%s860_s19] sm:$0x3f]  ;;  %v1029_v31 = vld [vmem:[#allocation10 + $0xb0] sm:$0xff]  ;;  %v891_v33 = vld [vmem:[#allocation7 + $0x40] sm:$0xff]  ;;  %vm1404_vm11 = vcmask 97280  }
  0x8b   : > { %872 = vst [vmem:[#allocation2 + $0x58] sm:$0x3] %v3016_v0  ;;  %v928_v25 = vmax.f32 %v927_v16, 0.0  ;;  %1037 = vmatpush.msra.mxu3 %v1019_v17  ;;  %v1030_v27 = vld [vmem:[#allocation10 + $0xb8] sm:$0xff]  ;;  %907 = vmatpush.msra.mxu0 %v893_v22  ;;  %v1111_v34 = vld [vmem:[#allocation13 + $0x68] sm:$0xff]  ;;  %v1015_v36 = vld [vmem:[#allocation10 + $0x40] sm:$0xff] }
  0x8c   : > { %876 = vst [vmem:[#allocation3] sm:$0xff] %v3016_v0  ;;  %969 = vmatpush.msra.mxu1 %v933_v14  ;;  %989 = vmatpush.msra.mxu2 %v934_v15  ;;  %v1028_v35 = vld [vmem:[#allocation10 + $0xa8] sm:$0xff]  ;;  %v890_v37 = vld [vmem:[#allocation7 + $0x38] sm:$0xff]  ;;  %v1110_v38 = vld [vmem:[#allocation13 + $0x60] sm:$0xff]  ;;  %s2227_s5 = smul.u32 48, %s3333_s20  ;;  %s3017_s7 = smov 120  }
  0x8d   : > { %1038 = vmatpush.msra.mxu3 %v1018_v21  ;;  %908 = vmatpush.msra.mxu0 %v892_v29  ;;  %v1027_v39 = vld [vmem:[#allocation10 + $0xa0] sm:$0xff]  ;;  %v1014_v40 = vld [vmem:[#allocation10 + $0x38] sm:$0xff]  ;;  %v889_v41 = vld [vmem:[#allocation7 + $0x30] sm:$0xff]  ;;  %878 = vst.msk [vmem:[#allocation3 + $0x8] sm:$0xff] %vm877_vm2, %v3016_v0  ;;  %vm1635_vm14 = vcmask 64512   ;;  %vm1644_vm15 = vcmask 982016  }
  0x8e   : > { %970 = vmatpush.msra.mxu1 %v931_v18  ;;  %990 = vmatpush.msra.mxu2 %v932_v19  ;;  %v1109_v42 = vld [vmem:[#allocation13 + $0x58] sm:$0xff]  ;;  %v1013_v44 = vld [vmem:[#allocation10 + $0x30] sm:$0xff]  ;;  %v888_v45 = vld [vmem:[#allocation7 + $0x28] sm:$0xff]  ;;  %s3502_s9 = scalar_lea.vmem [#allocation30], %s2227_s5  ;;  %s1887_s27 = scalar_lea.sflag [#allocation6], %s3333_s20 }
  0x8f   : > { %1039 = vmatpush.msra.mxu3 %v1017_v28  ;;  %909 = vmatpush.msra.mxu0 %v891_v33  ;;  %v1026_v43 = vld [vmem:[#allocation10 + $0x98] sm:$0xff]  ;;  %v1108_v46 = vld [vmem:[#allocation13 + $0x50] sm:$0xff]  ;;  %v1012_v48 = vld [vmem:[#allocation10 + $0x28] sm:$0xff] }
  0x90   : > { %971 = vmatpush.msra.mxu1 %v929_v23  ;;  %991 = vmatpush.msra.mxu2 %v930_v24  ;;  %v1025_v47 = vld [vmem:[#allocation10 + $0x90] sm:$0xff]  ;;  %v887_v49 = vld [vmem:[#allocation7 + $0x20] sm:$0xff]  ;;  %v1107_v50 = vld [vmem:[#allocation13 + $0x48] sm:$0xff] }
  0x91   : > { %2195 = vmatmul.msk.f32.vlgmr.msra.gmra.mxu1 %vm945_vm1, %v928_v25  ;;  %2197 = vmatmul.msk.f32.vlgmr.msra.gmra.mxu2 %vm945_vm1, %v928_v25  ;;  %v1024_v51 = vld [vmem:[#allocation10 + $0x88] sm:$0xff]  ;;  %v1011_v52 = vld [vmem:[#allocation10 + $0x20] sm:$0xff]  ;;  %v886_v53 = vld [vmem:[#allocation7 + $0x18] sm:$0xff] }
  0x92   : > { %1129 = vmatpush.msrb.mxu2 %v1113_v26  ;;  %1062 = vmatpush.msrb.mxu1 %v1030_v27  ;;  %v1106_v54 = vld [vmem:[#allocation13 + $0x40] sm:$0xff]  ;;  %v1089_v56 = vld [vmem:[#allocation12 + $0x78] sm:$0xff]  ;;  %v1088_v59 = vld [vmem:[#allocation12 + $0x70] sm:$0xff] }
  0x93   : > { %1040 = vmatpush.msra.mxu3 %v1016_v32  ;;  %910 = vmatpush.msra.mxu0 %v890_v37  ;;  %v1023_v55 = vld [vmem:[#allocation10 + $0x80] sm:$0xff]  ;;  %v1010_v57 = vld [vmem:[#allocation10 + $0x18] sm:$0xff]  ;;  %v1009_v60 = vld [vmem:[#allocation10 + $0x10] sm:$0xff] }
  0x94   : > { %1130 = vmatpush.msrb.mxu2 %v1112_v30  ;;  %1063 = vmatpush.msrb.mxu1 %v1029_v31  ;;  %v1105_v58 = vld [vmem:[#allocation13 + $0x38] sm:$0xff]  ;;  %v1104_v61 = vld [vmem:[#allocation13 + $0x30] sm:$0xff]  ;;  %v1087_v62 = vld [vmem:[#allocation12 + $0x68] sm:$0xff] }
  0x95   : > { %1041 = vmatpush.msra.mxu3 %v1015_v36  ;;  %911 = vmatpush.msra.mxu0 %v889_v41  ;;  %v1103_v63 = vld [vmem:[#allocation13 + $0x28] sm:$0xff]  ;;  %v1102_v1 = vld [vmem:[#allocation13 + $0x20] sm:$0xff]  ;;  %v1101_v2 = vld [vmem:[#allocation13 + $0x18] sm:$0xff] }
  0x96   : > { %1131 = vmatpush.msrb.mxu2 %v1111_v34  ;;  %1064 = vmatpush.msrb.mxu1 %v1028_v35  ;;  %v1086_v3 = vld [vmem:[#allocation12 + $0x60] sm:$0xff]  ;;  %v1008_v4 = vld [vmem:[#allocation10 + $0x8] sm:$0xff]  ;;  %v1100_v5 = vld [vmem:[#allocation13 + $0x10] sm:$0xff] }
  0x97   : > { %1042 = vmatpush.msra.mxu3 %v1014_v40  ;;  %912 = vmatpush.msra.mxu0 %v888_v45  ;;  %v885_v6 = vld [vmem:[#allocation7 + $0x10] sm:$0xff]  ;;  %v1085_v7 = vld [vmem:[#allocation12 + $0x58] sm:$0xff]  ;;  %v1007_v8 = vld [vmem:[#allocation10] sm:$0xff] }
  0x98   : > { %1132 = vmatpush.msrb.mxu2 %v1110_v38  ;;  %1065 = vmatpush.msrb.mxu1 %v1027_v39  ;;  %v1099_v9 = vld [vmem:[#allocation13 + $0x8] sm:$0xff]  ;;  %v1084_v11 = vld [vmem:[#allocation12 + $0x50] sm:$0xff]  ;;  %v1097_v12 = vld [vmem:[#allocation12 + $0xb8] sm:$0xff] }
  0x99   : > { %1043 = vmatpush.msra.mxu3 %v1013_v44  ;;  %913 = vmatpush.msra.mxu0 %v887_v49  ;;  %v884_v10 = vld [vmem:[#allocation7 + $0x8] sm:$0xff]  ;;  %v1098_v13 = vld [vmem:[#allocation13] sm:$0xff]  ;;  %v1121_v16 = vld [vmem:[#allocation13 + $0xb8] sm:$0xff] }
  0x9a   : > { %1133 = vmatpush.msrb.mxu2 %v1109_v42  ;;  %1066 = vmatpush.msrb.mxu1 %v1026_v43  ;;  %v883_v14 = vld [vmem:[#allocation7] sm:$0xff]  ;;  %v1083_v17 = vld [vmem:[#allocation12 + $0x48] sm:$0xff]  ;;  %v1096_v18 = vld [vmem:[#allocation12 + $0xb0] sm:$0xff] }
  0x9b   : > { %1044 = vmatpush.msra.mxu3 %v1012_v48  ;;  %914 = vmatpush.msra.mxu0 %v886_v53  ;;  %v879_v15 = vld [vmem:[%s3337_s23] sm:$0xff]  ;;  %v1095_v21 = vld [vmem:[#allocation12 + $0xa8] sm:$0xff]  ;;  %v1081_v23 = vld [vmem:[#allocation12 + $0x38] sm:$0xff] }
  0x9c   : > { %1134 = vmatpush.msrb.mxu2 %v1108_v46  ;;  %1067 = vmatpush.msrb.mxu1 %v1025_v47  ;;  %v881_v19 = vmax.f32 %v879_v15, 0.0  ;;  %v1120_v0 = vld [vmem:[#allocation13 + $0xb0] sm:$0xff]  ;;  %v1082_v20 = vld [vmem:[#allocation12 + $0x40] sm:$0xff]  ;;  %v1119_v22 = vld [vmem:[#allocation13 + $0xa8] sm:$0xff] }
  0x9d   : > { %1045 = vmatpush.msra.mxu3 %v1011_v52  ;;  %915 = vmatpush.msra.mxu0 %v885_v6  ;;  %v1094_v24 = vld [vmem:[#allocation12 + $0xa0] sm:$0xff]  ;;  %v1080_v26 = vld [vmem:[#allocation12 + $0x30] sm:$0xff]  ;;  %v1093_v27 = vld [vmem:[#allocation12 + $0x98] sm:$0xff] }
  0x9e   : > { %1135 = vmatpush.msrb.mxu2 %v1107_v50  ;;  %1068 = vmatpush.msrb.mxu1 %v1024_v51  ;;  %v1118_v25 = vld [vmem:[#allocation13 + $0xa0] sm:$0xff]  ;;  %v880_v28 = vld [vmem:[%s3337_s23 + $0x8] sm:$0xff]  ;;  %v1092_v31 = vld [vmem:[#allocation12 + $0x90] sm:$0xff]  ;;  %s3018_s23 = smov 8  }
  0x9f   : > { %1046 = vmatpush.msra.mxu3 %v1010_v57  ;;  %916 = vmatpush.msra.mxu0 %v884_v10  ;;  %v1117_v29 = vld [vmem:[#allocation13 + $0x98] sm:$0xff]  ;;  %v1079_v30 = vld [vmem:[#allocation12 + $0x28] sm:$0xff]  ;;  %v882_v32 = vmax.f32 %v880_v28, 0.0  ;;  %v1116_v33 = vld [vmem:[#allocation13 + $0x90] sm:$0xff] }
  0xa0   : > { %1136 = vmatpush.msrb.mxu2 %v1106_v54  ;;  %1069 = vmatpush.msrb.mxu1 %v1023_v55  ;;  %v1078_v34 = vld [vmem:[#allocation12 + $0x20] sm:$0xff]  ;;  %v1091_v35 = vld [vmem:[#allocation12 + $0x88] sm:$0xff]  ;;  %v1077_v37 = vld [vmem:[#allocation12 + $0x18] sm:$0xff] }
  0xa1   : > { %1047 = vmatpush.msra.mxu3 %v1009_v60  ;;  %917 = vmatpush.msra.mxu0 %v883_v14  ;;  %v1115_v36 = vld [vmem:[#allocation13 + $0x88] sm:$0xff]  ;;  %v1090_v38 = vld [vmem:[#allocation12 + $0x80] sm:$0xff]  ;;  %v1076_v40 = vld [vmem:[#allocation12 + $0x10] sm:$0xff] }
  0xa2   : > { %1169 = vmatpush.msra.mxu1 %v1089_v56  ;;  %1137 = vmatpush.msrb.mxu2 %v1105_v58  ;;  %v1114_v39 = vld [vmem:[#allocation13 + $0x80] sm:$0xff]  ;;  %v1075_v41 = vld [vmem:[#allocation12 + $0x8] sm:$0xff]  ;;  %v1333_v49 = vld [vmem:[#allocation18 + $0x78] sm:$0xff] }
  0xa3   : > { %1048 = vmatpush.msra.mxu3 %v1008_v4  ;;  %2192 = vmatmul.msk.f32.vlgmr.msra.gmra.mxu0 %vm895_vm3, %v881_v19  ;;  %v1074_v42 = vld [vmem:[#allocation12] sm:$0xff]  ;;  %v1247_v51 = vld [vmem:[#allocation15 + $0x78] sm:$0xff]  ;;  %v1332_v52 = vld [vmem:[#allocation18 + $0x70] sm:$0xff] }
  0xa4   : > { %1170 = vmatpush.msra.mxu1 %v1088_v59  ;;  %1138 = vmatpush.msrb.mxu2 %v1104_v61  ;;  %v1246_v53 = vld [vmem:[#allocation15 + $0x70] sm:$0xff]  ;;  %v1331_v54 = vld [vmem:[#allocation18 + $0x68] sm:$0xff]  ;;  %v1330_v60 = vld [vmem:[#allocation18 + $0x60] sm:$0xff] }
  0xa5   : > { %1049 = vmatpush.msra.mxu3 %v1007_v8  ;;  %v1245_v59 = vld [vmem:[#allocation15 + $0x68] sm:$0xff]  ;;  %v1326_v6 = vld [vmem:[#allocation18 + $0x40] sm:$0xff]  ;;  %v1325_v8 = vld [vmem:[#allocation18 + $0x38] sm:$0xff] }
  0xa6   : > { %1171 = vmatpush.msra.mxu1 %v1087_v62  ;;  %1139 = vmatpush.msrb.mxu2 %v1103_v63  ;;  %v1244_v62 = vld [vmem:[#allocation15 + $0x60] sm:$0xff]  ;;  %v1329_v63 = vld [vmem:[#allocation18 + $0x58] sm:$0xff]  ;;  %v1327_v4 = vld [vmem:[#allocation18 + $0x48] sm:$0xff] }
  0xa7   : > { %1197 = vmatpush.msrb.mxu3 %v1097_v12  ;;  %v1324_v10 = vld [vmem:[#allocation18 + $0x30] sm:$0xff]  ;;  %v1237_v12 = vld [vmem:[#allocation15 + $0x28] sm:$0xff]  ;;  %v1236_v14 = vld [vmem:[#allocation15 + $0x20] sm:$0xff] }
  0xa8   : > { %1140 = vmatpush.msrb.mxu2 %v1102_v1  ;;  %1172 = vmatpush.msra.mxu1 %v1086_v3  ;;  %v1243_v1 = vld [vmem:[#allocation15 + $0x58] sm:$0xff]  ;;  %v1242_v3 = vld [vmem:[#allocation15 + $0x50] sm:$0xff]  ;;  %v1322_v15 = vld [vmem:[#allocation18 + $0x20] sm:$0xff] }
  0xa9   : > { %1198 = vmatpush.msrb.mxu3 %v1096_v18  ;;  %v1234_v18 = vld [vmem:[#allocation15 + $0x10] sm:$0xff] }
  0xaa   : > { %1141 = vmatpush.msrb.mxu2 %v1101_v2  ;;  %1173 = vmatpush.msra.mxu1 %v1085_v7  ;;  %v1328_v2 = vld [vmem:[#allocation18 + $0x50] sm:$0xff]  ;;  %v1240_v7 = vld [vmem:[#allocation15 + $0x40] sm:$0xff] }
  0xab   : > { %1199 = vmatpush.msrb.mxu3 %v1095_v21  ;;  %2193 = vmatmul.msk.f32.gmra.mxu0 %vm895_vm3, %v882_v32  ;;  %v1320_v19 = vld [vmem:[#allocation18 + $0x10] sm:$0xff]  ;;  %v1469_v32 = vld [vmem:[#allocation22 + $0x48] sm:$0xff] }
  0xac   : > { %1142 = vmatpush.msrb.mxu2 %v1100_v5  ;;  %1174 = vmatpush.msra.mxu1 %v1084_v11  ;;  %v1241_v5 = vld [vmem:[#allocation15 + $0x48] sm:$0xff]  ;;  %v1238_v11 = vld [vmem:[#allocation15 + $0x30] sm:$0xff] }
  0xad   : > { %1200 = vmatpush.msrb.mxu3 %v1094_v24  ;;  %v1318_v24 = vld [vmem:[#allocation18] sm:$0xff]  ;;  %v3412_v28 = vld [vmem:[#allocation19 + $0x50] sm:$0xff] }
  0xae   : > { %1143 = vmatpush.msrb.mxu2 %v1099_v9  ;;  %1175 = vmatpush.msra.mxu1 %v1083_v17  ;;  %v1239_v9 = vld [vmem:[#allocation15 + $0x38] sm:$0xff] }
  0xaf   : > { %1201 = vmatpush.msrb.mxu3 %v1093_v27  ;;  %v1321_v17 = vld [vmem:[#allocation18 + $0x18] sm:$0xff] }
  0xb0   : > { %1144 = vmatpush.msrb.mxu2 %v1098_v13  ;;  %1176 = vmatpush.msra.mxu1 %v1082_v20  ;;  %v1323_v13 = vld [vmem:[#allocation18 + $0x28] sm:$0xff]  ;;  %v1457_v27 = vld [vmem:[#allocation21 + $0x58] sm:$0xff] }
  0xb1   : > { %1202 = vmatpush.msrb.mxu3 %v1092_v31  ;;  %v1319_v20 = vld [vmem:[#allocation18 + $0x8] sm:$0xff] }
  0xb2   : > { %1157 = vmatpush.msra.mxu2 %v1121_v16  ;;  %1177 = vmatpush.msra.mxu1 %v1081_v23  ;;  %v1235_v16 = vld [vmem:[#allocation15 + $0x18] sm:$0xff]  ;;  %v1232_v23 = vld [vmem:[#allocation15] sm:$0xff]  ;;  %v3415_v31 = vld [vmem:[#allocation19 + $0x48] sm:$0xff] }
  0xb3   : > { %1203 = vmatpush.msrb.mxu3 %v1091_v35  ;;  %v1468_v35 = vld [vmem:[#allocation22 + $0x40] sm:$0xff] }
  0xb4   : > { %1158 = vmatpush.msra.mxu2 %v1120_v0  ;;  %1178 = vmatpush.msra.mxu1 %v1080_v26  ;;  %v1233_v0 = vld [vmem:[#allocation15 + $0x8] sm:$0xff]  ;;  %v1471_v26 = vld [vmem:[#allocation22 + $0x58] sm:$0xff] }
  0xb5   : > { %1204 = vmatpush.msrb.mxu3 %v1090_v38 }
  0xb6   : > { %1159 = vmatpush.msra.mxu2 %v1119_v22  ;;  %1179 = vmatpush.msra.mxu1 %v1079_v30  ;;  %v1456_v30 = vld [vmem:[#allocation21 + $0x50] sm:$0xff] }
  0xb8   : > { %1160 = vmatpush.msra.mxu2 %v1118_v25  ;;  %1180 = vmatpush.msra.mxu1 %v1078_v34  ;;  %v3409_v25 = vld [vmem:[#allocation19 + $0x58] sm:$0xff]  ;;  %v3417_v34 = vld [vmem:[#allocation19 + $0x40] sm:$0xff] }
  0xba   : > { %1161 = vmatpush.msra.mxu2 %v1117_v29  ;;  %1181 = vmatpush.msra.mxu1 %v1077_v37  ;;  %v1470_v29 = vld [vmem:[#allocation22 + $0x50] sm:$0xff] }
  0xbc   : > { %1162 = vmatpush.msra.mxu2 %v1116_v33  ;;  %1182 = vmatpush.msra.mxu1 %v1076_v40  ;;  %v1455_v33 = vld [vmem:[#allocation21 + $0x48] sm:$0xff] }
  0xbe   : > { %1163 = vmatpush.msra.mxu2 %v1115_v36  ;;  %1183 = vmatpush.msra.mxu1 %v1075_v41  ;;  %v1454_v36 = vld [vmem:[#allocation21 + $0x40] sm:$0xff]  ;;  %v3421_v41 = vld [vmem:[#allocation19 + $0x38] sm:$0xff] }
  0xc0   : > { %1164 = vmatpush.msra.mxu2 %v1114_v39  ;;  %1184 = vmatpush.msra.mxu1 %v1074_v42  ;;  %v1467_v42 = vld [vmem:[#allocation22 + $0x38] sm:$0xff] }
 0x10e   : > { %v973_v43 = vpop.f32.mrf.mxu1 }
 0x10f   : > { %996 = vst [vmem:[#allocation3] sm:$0x3f] %v973_v43  ;;  %v1453_v43 = vld [vmem:[#allocation21 + $0x38] sm:$0xff] }
 0x114   : > { %v993_v44 = vpop.f32.mrf.mxu2 }
 0x115   : > { %998 = vst.msk [vmem:[#allocation3 + $0x8] sm:$0x3f] %vm997_vm4, %v993_v44  ;;  %v3424_v44 = vld [vmem:[#allocation19 + $0x30] sm:$0xff] }
 0x116   : > { %v999_v45 = vld [vmem:[#allocation3] sm:$0x3f] }
 0x117   : > { %v1003_v46 = vld [vmem:[#allocation3] sm:$0x7e]  ;;  %v1001_v47 = vmax.f32 %v999_v45, 0.0 }
 0x118   : > { %v1005_v48 = vmax.f32 %v1003_v46, 0.0  ;;  %v1466_v45 = vld [vmem:[#allocation22 + $0x30] sm:$0xff] }
 0x119   : > { %1050 = vmatmul.f32.vlgmr.msra.gmra.mxu3 %v1001_v47  ;;  %v1452_v46 = vld [vmem:[#allocation21 + $0x30] sm:$0xff] }
 0x11a   : > { %v1124_v50 = vrot.slane %v1005_v48, 1  ;;  %1334 = vmatpush.msra.mxu3 %v1333_v49  ;;  %v1465_v48 = vld [vmem:[#allocation22 + $0x28] sm:$0xff] }
 0x11b   : > { %v1451_v49 = vld [vmem:[#allocation21 + $0x28] sm:$0xff] }
 0x11c   : > { %1145 = vmatmul.f32.vlgmr.msrb.gmra.mxu2 %v1124_v50  ;;  %v1000_v55 = vld [vmem:[#allocation3 + $0x8] sm:$0x3f]  ;;  %1335 = vmatpush.msra.mxu3 %v1332_v52  ;;  %v3430_v52 = vld [vmem:[#allocation19 + $0x20] sm:$0xff] }
 0x11d   : > { %v1004_v56 = vld [vmem:[#allocation3 + $0x8] sm:$0x7e]  ;;  %1291 = vmatpush.msrb.mxu2 %v1247_v51  ;;  %v1002_v57 = vmax.f32 %v1000_v55, 0.0 }
 0x11e   : > { %v1006_v58 = vmax.f32 %v1004_v56, 0.0  ;;  %1336 = vmatpush.msra.mxu3 %v1331_v54  ;;  %v1450_v54 = vld [vmem:[#allocation21 + $0x20] sm:$0xff] }
 0x11f   : > { %1292 = vmatpush.msrb.mxu2 %v1246_v53  ;;  %2198 = vmatmul.msk.f32.vlgmr.msrb.gmra.mxu1 %vm877_vm2, %v1002_v57  ;;  %v1464_v53 = vld [vmem:[#allocation22 + $0x20] sm:$0xff] }
 0x120   : > { %v1125_v61 = vrot.slane %v1006_v58, 1  ;;  %1337 = vmatpush.msra.mxu3 %v1330_v60  ;;  %v3403_v21 = vpop.f32.mrf.mxu0  ;;  %1385 = vmatpush.msrb.mxu1 %v3409_v25  ;;  %v1463_v58 = vld [vmem:[#allocation22 + $0x18] sm:$0xff]  ;;  %v3435_v60 = vld [vmem:[#allocation19 + $0x10] sm:$0xff] }
 0x121   : > { %1293 = vmatpush.msrb.mxu2 %v1245_v59  ;;  %2200 = vmatmul.msk.f32.vlgmr.msrb.gmra.mxu3 %vm877_vm2, %v1002_v57  ;;  %925 = vst [vmem:[#allocation2 + $0x1] sm:$0xff] %v3403_v21  ;;  %v3433_v57 = vld [vmem:[#allocation19 + $0x18] sm:$0xff] }
 0x122   : > { %1338 = vmatpush.msra.mxu3 %v1329_v63  ;;  %1386 = vmatpush.msrb.mxu1 %v3412_v28  ;;  %v1449_v59 = vld [vmem:[#allocation21 + $0x18] sm:$0xff]  ;;  %v3438_v63 = vld [vmem:[#allocation19 + $0x8] sm:$0xff] }
 0x123   : > { %1294 = vmatpush.msrb.mxu2 %v1244_v62  ;;  %v1448_v62 = vld [vmem:[#allocation21 + $0x10] sm:$0xff] }
 0x124   : > { %2199 = vmatmul.msk.f32.vlgmr.msra.gmra.mxu2 %vm877_vm2, %v1125_v61  ;;  %1339 = vmatpush.msra.mxu3 %v1328_v2  ;;  %v1462_v61 = vld [vmem:[#allocation22 + $0x10] sm:$0xff]  ;;  %v1447_v2 = vld [vmem:[#allocation21 + $0x8] sm:$0xff] }
 0x125   : > { %1295 = vmatpush.msrb.mxu2 %v1243_v1  ;;  %1387 = vmatpush.msrb.mxu1 %v3415_v31  ;;  %v1461_v1 = vld [vmem:[#allocation22 + $0x8] sm:$0xff] }
 0x126   : > { %1340 = vmatpush.msra.mxu3 %v1327_v4  ;;  %v1460_v4 = vld [vmem:[#allocation22] sm:$0xff] }
 0x127   : > { %1296 = vmatpush.msrb.mxu2 %v1242_v3  ;;  %1185 = vmatmul.f32.vlgmr.msra.gmra.mxu1 %v1001_v47  ;;  %v3427_v47 = vld [vmem:[#allocation19 + $0x28] sm:$0xff]  ;;  %v3441_v3 = vld [vmem:[#allocation19] sm:$0xff] }
 0x128   : > { %1341 = vmatpush.msra.mxu3 %v1326_v6  ;;  %v3406_v22 = vpop.f32.mrf.mxu0  ;;  %v1228_v37 = vld [vmem:[#allocation2] sm:$0xff]  ;;  %1388 = vmatpush.msrb.mxu1 %v3417_v34 }
 0x129   : > { %1297 = vmatpush.msrb.mxu2 %v1241_v5  ;;  %926 = vst [vmem:[#allocation2 + $0x9] sm:$0xff] %v3406_v22  ;;  %v1230_v39 = vmax.f32 %v1228_v37, 0.0  ;;  %v1446_v5 = vld [vmem:[#allocation21] sm:$0xff] }
 0x12a   : > { %1342 = vmatpush.msra.mxu3 %v1325_v8  ;;  %1389 = vmatpush.msrb.mxu1 %v3421_v41  ;;  %v1252_v37 = vld [vmem:[#allocation16] sm:$0xff] }
 0x12b   : > { %1298 = vmatpush.msrb.mxu2 %v1240_v7 }
 0x12c   : > { %1343 = vmatpush.msra.mxu3 %v1324_v10  ;;  %1390 = vmatpush.msrb.mxu1 %v3424_v44  ;;  %v1267_v10 = vld [vmem:[#allocation16 + $0x78] sm:$0xff] }
 0x12d   : > { %1299 = vmatpush.msrb.mxu2 %v1239_v9  ;;  %1268 = vmatpush.msrb.mxu0 %v1267_v10 }
 0x12e   : > { %1344 = vmatpush.msra.mxu3 %v1323_v13  ;;  %1391 = vmatpush.msrb.mxu1 %v3427_v47  ;;  %v1264_v13 = vld [vmem:[#allocation16 + $0x60] sm:$0xff] }
 0x12f   : > { %1300 = vmatpush.msrb.mxu2 %v1238_v11  ;;  %v1266_v11 = vld [vmem:[#allocation16 + $0x70] sm:$0xff] }
 0x130   : > { %1345 = vmatpush.msra.mxu3 %v1322_v15  ;;  %v1314_v38 = vld [vmem:[#allocation2 + $0x2] sm:$0xff]  ;;  %v1315_v51 = vld [vmem:[#allocation2 + $0xa] sm:$0xff]  ;;  %1392 = vmatpush.msrb.mxu1 %v3430_v52 }
 0x131   : > { %1301 = vmatpush.msrb.mxu2 %v1237_v12  ;;  %v1316_v40 = vmax.f32 %v1314_v38, 0.0  ;;  %v1229_v50 = vld [vmem:[#allocation2 + $0x8] sm:$0xff]  ;;  %v1317_v56 = vmax.f32 %v1315_v51, 0.0  ;;  %v1265_v12 = vld [vmem:[#allocation16 + $0x68] sm:$0xff]  ;;  %1269 = vmatpush.msrb.mxu0 %v1266_v11  ;;  %v1263_v15 = vld [vmem:[#allocation16 + $0x58] sm:$0xff]  ;;  %v1250_v38 = vmax.f32 %v3403_v21, 0.0 }
 0x132   : > { %1346 = vmatpush.msra.mxu3 %v1321_v17  ;;  %v1231_v55 = vmax.f32 %v1229_v50, 0.0  ;;  %1393 = vmatpush.msrb.mxu1 %v3433_v57  ;;  %v1537_v50 = vld [vmem:[#allocation24 + $0x28] sm:$0xff]  ;;  %v1536_v51 = vld [vmem:[#allocation24 + $0x20] sm:$0xff] }
 0x133   : > { %1302 = vmatpush.msrb.mxu2 %v1236_v14  ;;  %1270 = vmatpush.msrb.mxu0 %v1265_v12 }
 0x134   : > { %1347 = vmatpush.msra.mxu3 %v1320_v19  ;;  %1394 = vmatpush.msrb.mxu1 %v3435_v60 }
 0x135   : > { %1303 = vmatpush.msrb.mxu2 %v1235_v16  ;;  %1271 = vmatpush.msrb.mxu0 %v1264_v13 }
 0x136   : > { %1348 = vmatpush.msra.mxu3 %v1319_v20  ;;  %1395 = vmatpush.msrb.mxu1 %v3438_v63  ;;  %v1261_v20 = vld [vmem:[#allocation16 + $0x48] sm:$0xff] }
 0x137   : > { %1304 = vmatpush.msrb.mxu2 %v1234_v18  ;;  %v1262_v18 = vld [vmem:[#allocation16 + $0x50] sm:$0xff]  ;;  %1272 = vmatpush.msrb.mxu0 %v1263_v15 }
 0x138   : > { %1349 = vmatpush.msra.mxu3 %v1318_v24  ;;  %1396 = vmatpush.msrb.mxu1 %v3441_v3  ;;  %v1260_v24 = vld [vmem:[#allocation16 + $0x40] sm:$0xff] }
 0x139   : > { %1305 = vmatpush.msrb.mxu2 %v1233_v0  ;;  %1350 = vmatmul.f32.vlgmr.msra.gmra.mxu3 %v1316_v40 }
 0x13a   : > { %1511 = vmatpush.msrb.mxu3 %v1457_v27  ;;  %1599 = vmatpush.msra.mxu1 %v3409_v25  ;;  %v1259_v25 = vld [vmem:[#allocation16 + $0x38] sm:$0xff]  ;;  %v1257_v27 = vld [vmem:[#allocation16 + $0x28] sm:$0xff] }
 0x13b   : > { %1306 = vmatpush.msrb.mxu2 %v1232_v23  ;;  %1273 = vmatpush.msrb.mxu0 %v1262_v18 }
 0x13c   : > { %1512 = vmatpush.msrb.mxu3 %v1456_v30  ;;  %1307 = vmatmul.f32.vlgmr.msrb.gmra.mxu2 %v1230_v39  ;;  %v1255_v30 = vld [vmem:[#allocation16 + $0x18] sm:$0xff]  ;;  %v1251_v39 = vmax.f32 %v3406_v22, 0.0 }
 0x13d   : > { %1482 = vmatpush.msra.mxu2 %v1471_v26  ;;  %1600 = vmatpush.msra.mxu1 %v3412_v28  ;;  %v1258_v26 = vld [vmem:[#allocation16 + $0x30] sm:$0xff]  ;;  %v1256_v28 = vld [vmem:[#allocation16 + $0x20] sm:$0xff] }
 0x13e   : > { %1513 = vmatpush.msrb.mxu3 %v1455_v33  ;;  %1274 = vmatpush.msrb.mxu0 %v1261_v20 }
 0x13f   : > { %1483 = vmatpush.msra.mxu2 %v1470_v29  ;;  %1601 = vmatpush.msra.mxu1 %v3415_v31 }
 0x140   : > { %1514 = vmatpush.msrb.mxu3 %v1454_v36  ;;  %1275 = vmatpush.msrb.mxu0 %v1260_v24  ;;  %v1253_v36 = vld [vmem:[#allocation16 + $0x8] sm:$0xff] }
 0x141   : > { %1484 = vmatpush.msra.mxu2 %v1469_v32  ;;  %1353 = vmatmul.f32.gmra.mxu3 %v1317_v56 }
 0x142   : > { %1515 = vmatpush.msrb.mxu3 %v1453_v43  ;;  %1602 = vmatpush.msra.mxu1 %v3417_v34  ;;  %v1543_v43 = vld [vmem:[#allocation24 + $0x58] sm:$0xff] }
 0x143   : > { %1485 = vmatpush.msra.mxu2 %v1468_v35  ;;  %1276 = vmatpush.msrb.mxu0 %v1259_v25  ;;  %v1254_v35 = vld [vmem:[#allocation16 + $0x10] sm:$0xff] }
 0x144   : > { %1516 = vmatpush.msrb.mxu3 %v1452_v46  ;;  %1310 = vmatmul.f32.gmra.mxu2 %v1231_v55  ;;  %v1540_v46 = vld [vmem:[#allocation24 + $0x40] sm:$0xff] }
 0x145   : > { %1486 = vmatpush.msra.mxu2 %v1467_v42  ;;  %1603 = vmatpush.msra.mxu1 %v3421_v41  ;;  %v3481_v42 = vld [vmem:[%s3666_s24] sm:$0xff]  ;;  %v1532_v55 = vld [vmem:[#allocation24] sm:$0xff] }
 0x146   : > { %1517 = vmatpush.msrb.mxu3 %v1451_v49  ;;  %1277 = vmatpush.msrb.mxu0 %v1258_v26  ;;  %v1538_v49 = vld [vmem:[#allocation24 + $0x30] sm:$0xff] }
 0x147   : > { %1487 = vmatpush.msra.mxu2 %v1466_v45  ;;  %1604 = vmatpush.msra.mxu1 %v3424_v44  ;;  %v1542_v44 = vld [vmem:[#allocation24 + $0x50] sm:$0xff]  ;;  %v1541_v45 = vld [vmem:[#allocation24 + $0x48] sm:$0xff] }
 0x148   : > { %1518 = vmatpush.msrb.mxu3 %v1450_v54  ;;  %1278 = vmatpush.msrb.mxu0 %v1257_v27  ;;  %v1533_v54 = vld [vmem:[#allocation24 + $0x8] sm:$0xff] }
 0x149   : > { %1488 = vmatpush.msra.mxu2 %v1465_v48  ;;  %1605 = vmatpush.msra.mxu1 %v3427_v47  ;;  %v3488_v47 = vld [vmem:[%s3666_s24 + $0x8] sm:$0xff]  ;;  %v1539_v48 = vld [vmem:[#allocation24 + $0x38] sm:$0xff] }
 0x14a   : > { %1519 = vmatpush.msrb.mxu3 %v1449_v59  ;;  %1279 = vmatpush.msrb.mxu0 %v1256_v28 }
 0x14b   : > { %1489 = vmatpush.msra.mxu2 %v1464_v53  ;;  %1606 = vmatpush.msra.mxu1 %v3430_v52  ;;  %v1535_v52 = vld [vmem:[#allocation24 + $0x18] sm:$0xff]  ;;  %v1534_v53 = vld [vmem:[#allocation24 + $0x10] sm:$0xff] }
 0x14c   : > { %1520 = vmatpush.msrb.mxu3 %v1448_v62  ;;  %1280 = vmatpush.msrb.mxu0 %v1255_v30  ;;  %v1766_v30 = vld [vmem:[#allocation25 + $0x78] sm:$0xff] }
 0x14d   : > { %1490 = vmatpush.msra.mxu2 %v1463_v58  ;;  %1607 = vmatpush.msra.mxu1 %v3433_v57 }
 0x14e   : > { %1521 = vmatpush.msrb.mxu3 %v1447_v2  ;;  %1281 = vmatpush.msrb.mxu0 %v1254_v35  ;;  %v1620_v2 = vlaneseq  ;;  %v1852_v35 = vld [vmem:[#allocation28 + $0x78] sm:$0xff] }
 0x14f   : > { %1491 = vmatpush.msra.mxu2 %v1462_v61  ;;  %1608 = vmatpush.msra.mxu1 %v3435_v60 }
 0x150   : > { %1522 = vmatpush.msrb.mxu3 %v1446_v5  ;;  %1282 = vmatpush.msrb.mxu0 %v1253_v36  ;;  %v1783_v36 = vld [vmem:[#allocation27 + $0x60] sm:$0xff] }
 0x151   : > { %1492 = vmatpush.msra.mxu2 %v1461_v1  ;;  %1609 = vmatpush.msra.mxu1 %v3438_v63 }
 0x152   : > { %1283 = vmatpush.msrb.mxu0 %v1252_v37  ;;  %v1763_v37 = vld [vmem:[#allocation25 + $0x60] sm:$0xff] }
 0x153   : > { %1493 = vmatpush.msra.mxu2 %v1460_v4  ;;  %1610 = vmatpush.msra.mxu1 %v3441_v3 }
 0x154   : > { %1284 = vmatmul.f32.vlgmr.msrb.gmra.mxu0 %v1250_v38  ;;  %v1851_v38 = vld [vmem:[#allocation28 + $0x70] sm:$0xff] }
 0x15c   : > { %1287 = vmatmul.f32.gmra.mxu0 %v1251_v39  ;;  %v1850_v39 = vld [vmem:[#allocation28 + $0x68] sm:$0xff] }
 0x19c   : > { %v1051_v6 = vpop.f32.mrf.mxu3  ;;  %v1071_v7 = vpop.f32.mrf.mxu1 }
 0x19d   : > { %v1072_v8 = vadd.f32 %v1071_v7, %v1051_v6  ;;  %v1621_v6 = vshrl.u32 %v1620_v2, 7 }
 0x19f   : > { %v1146_v9 = vpop.f32.mrf.mxu2  ;;  %1211 = vst.msk [vmem:[#allocation2 + $0x19] sm:$0x1] %vm1210_vm5, %v1072_v8  ;;  %vm1623_vm12 = vcmp.ge.s32.totalorder %v1621_v6, 1 }
 0x1a0   : > { %1214 = vst.msk [vmem:[#allocation2 + $0x1a] sm:$0x2] %vm1213_vm6, %v1072_v8 }
 0x1a1   : > { %1217 = vst.msk [vmem:[#allocation2 + $0x1b] sm:$0x4] %vm1216_vm7, %v1072_v8 }
 0x1a2   : > { %1220 = vst.msk [vmem:[#allocation2 + $0x1c] sm:$0x8] %vm1219_vm8, %v1072_v8 }
 0x1a3   : > { %1223 = vst.msk [vmem:[#allocation2 + $0x1d] sm:$0x10] %vm1222_vm9, %v1072_v8 }
 0x1a4   : > { %1226 = vst.msk [vmem:[#allocation2 + $0x1e] sm:$0x20] %vm1225_vm10, %v1072_v8  ;;  %v1186_v17 = vpop.f32.mrf.mxu1  ;;  %v1206_v0 = vpop.f32.mrf.mxu3 }
 0x1a7   : > { %v1166_v14 = vpop.f32.mrf.mxu2 }
 0x1a8   : > { %v1167_v16 = vadd.f32 %v1166_v14, %v1146_v9 }
 0x1aa   : > { %v1187_v19 = vadd.f32 %v1186_v17, %v1167_v16 }
 0x1ac   : > { %v1207_v23 = vadd.f32 %v1206_v0, %v1187_v19  ;;  %v1622_v0 = vadd.s32 8, %v1621_v6 }
 0x1ae   : > { %1212 = vst.msk [vmem:[#allocation2 + $0x1a] sm:$0x1] %vm1210_vm5, %v1207_v23  ;;  %vm1680_vm13 = vcmp.le.s32.totalorder %v1622_v0, 14  ;;  %v1753_v0 = vld [vmem:[#allocation25 + $0x10] sm:$0xff] }
 0x1af   : > { %1215 = vst.msk [vmem:[#allocation2 + $0x1b] sm:$0x2] %vm1213_vm6, %v1207_v23 }
 0x1b0   : > { %1218 = vst.msk [vmem:[#allocation2 + $0x1c] sm:$0x4] %vm1216_vm7, %v1207_v23 }
 0x1b1   : > { %1221 = vst.msk [vmem:[#allocation2 + $0x1d] sm:$0x8] %vm1219_vm8, %v1207_v23 }
 0x1b2   : > { %1224 = vst.msk [vmem:[#allocation2 + $0x1e] sm:$0x10] %vm1222_vm9, %v1207_v23 }
 0x1b3   : > { %1227 = vst.msk [vmem:[#allocation2 + $0x1f] sm:$0x20] %vm1225_vm10, %v1207_v23 }
 0x1b7   : > { %v1444_v29 = vld [vmem:[#allocation2 + $0x18] sm:$0xff] }
 0x1b8   : > { %v1359_v31 = vld [vmem:[#allocation2 + $0x19] sm:$0xff]  ;;  %2208 = vmatmul.msk.f32.vlgmr.msrb.gmra.mxu3 %vm895_vm3, %v1444_v29 }
 0x1b9   : > { %2201 = vmatmul.msk.f32.vlgmr.msrb.gmra.mxu1 %vm895_vm3, %v1359_v31  ;;  %2206 = vmatmul.msk.f32.vlgmr.msra.gmra.mxu2 %vm895_vm3, %v1359_v31  ;;  %v1445_v32 = vld [vmem:[#allocation2 + $0x20] sm:$0xf]  ;;  %v1785_v31 = vld [vmem:[#allocation27 + $0x70] sm:$0xff] }
 0x1ba   : > { %v1360_v33 = vld [vmem:[#allocation2 + $0x21] sm:$0xf]  ;;  %1853 = vmatpush.msrb.mxu1 %v1852_v35 }
 0x1bb   : > { %v1459_v34 = vld [vmem:[#allocation2 + $0x21] sm:$0xf] }
 0x1bc   : > { %v1530_v56 = vld [vmem:[#allocation2 + $0x1a] sm:$0xff]  ;;  %v1531_v57 = vld [vmem:[#allocation2 + $0x22] sm:$0xf]  ;;  %v1351_v62 = vpop.f32.mrf.mxu3  ;;  %1854 = vmatpush.msrb.mxu1 %v1851_v38 }
 0x1bd   : > { %v1786_v29 = vld [vmem:[#allocation27 + $0x78] sm:$0xff] }
 0x1be   : > { %1787 = vmatpush.msra.mxu3 %v1786_v29  ;;  %1855 = vmatpush.msrb.mxu1 %v1850_v39  ;;  %v1751_v29 = vld [vmem:[#allocation25] sm:$0xff] }
 0x1bf   : > { %v1308_v60 = vpop.f32.mrf.mxu2 }
 0x1c0   : > { %2209 = vmatmul.msk.f32.gmra.mxu3 %vm895_vm3, %v1445_v32  ;;  %v1765_v32 = vld [vmem:[#allocation25 + $0x70] sm:$0xff] }
 0x1c1   : > { %2202 = vmatmul.msk.f32.gmra.mxu1 %vm895_vm3, %v1360_v33  ;;  %2207 = vmatmul.msk.f32.gmra.mxu2 %vm895_vm3, %v1459_v34  ;;  %v1784_v33 = vld [vmem:[#allocation27 + $0x68] sm:$0xff] }
 0x1c2   : > { %v1764_v34 = vld [vmem:[#allocation25 + $0x68] sm:$0xff]  ;;  %1788 = vmatpush.msra.mxu3 %v1785_v31  ;;  %v1840_v31 = vld [vmem:[#allocation28 + $0x18] sm:$0xff] }
 0x1c4   : > { %v1354_v7 = vpop.f32.mrf.mxu3  ;;  %1789 = vmatpush.msra.mxu3 %v1784_v33 }
 0x1c6   : > { %1790 = vmatpush.msra.mxu3 %v1783_v36 }
 0x1c7   : > { %v1311_v4 = vpop.f32.mrf.mxu2 }
 0x1d1   : > { %v1285_v58 = vpop.f32.mrf.mxu0 }
 0x1d2   : > { %v1309_v61 = vadd.f32 %v1308_v60, %v1285_v58  ;;  %v1776_v58 = vld [vmem:[#allocation27 + $0x28] sm:$0xff] }
 0x1d4   : > { %v1357_v63 = vadd.f32 %v1351_v62, %v1309_v61  ;;  %v1774_v61 = vld [vmem:[#allocation27 + $0x18] sm:$0xff]  ;;  %v1757_v62 = vld [vmem:[#allocation25 + $0x30] sm:$0xff] }
 0x1d9   : > { %v1288_v59 = vpop.f32.mrf.mxu0 }
 0x1da   : > { %v1312_v5 = vadd.f32 %v1311_v4, %v1288_v59  ;;  %v1775_v59 = vld [vmem:[#allocation27 + $0x20] sm:$0xff]  ;;  %v1846_v4 = vld [vmem:[#allocation28 + $0x48] sm:$0xff] }
 0x1dc   : > { %v1358_v8 = vadd.f32 %v1354_v7, %v1312_v5  ;;  %v1772_v5 = vld [vmem:[#allocation27 + $0x8] sm:$0xff]  ;;  %v1755_v7 = vld [vmem:[#allocation25 + $0x20] sm:$0xff] }
 0x236   : > { %v1398_v40 = vpop.f32.mrf.mxu1 }
 0x23b   : > { %v1524_v14 = vpop.f32.mrf.mxu3 }
 0x23c   : > { %v1495_v13 = vpop.f32.mrf.mxu2 }
 0x23d   : > { %v1525_v16 = vadd.f32 %v1524_v14, %v1495_v13  ;;  %v1844_v14 = vld [vmem:[#allocation28 + $0x38] sm:$0xff] }
 0x23e   : > { %v1401_v41 = vpop.f32.mrf.mxu1 }
 0x23f   : > { %2203 = vmatpush.msk.msra.mxu0 %vm949_vm0, %v1401_v41  ;;  %v1762_v41 = vld [vmem:[#allocation25 + $0x58] sm:$0xff] }
 0x241   : > { %1429 = vmatpush.msra.mxu0 %v1398_v40  ;;  %v1782_v40 = vld [vmem:[#allocation27 + $0x58] sm:$0xff] }
 0x242   : > { %2204 = vmatmul.msk.f32.vlgmr.msra.gmra.mxu0 %vm1404_vm11, %v3481_v42  ;;  %1791 = vmatpush.msra.mxu3 %v1782_v40 }
 0x243   : > { %1554 = vmatpush.msrb.mxu0 %v1543_v43  ;;  %v1527_v23 = vpop.f32.mrf.mxu3  ;;  %v1849_v43 = vld [vmem:[#allocation28 + $0x60] sm:$0xff] }
 0x244   : > { %v1498_v20 = vpop.f32.mrf.mxu2  ;;  %1856 = vmatpush.msrb.mxu1 %v1849_v43 }
 0x245   : > { %1555 = vmatpush.msrb.mxu0 %v1542_v44  ;;  %v1528_v24 = vadd.f32 %v1527_v23, %v1498_v20  ;;  %v1781_v44 = vld [vmem:[#allocation27 + $0x50] sm:$0xff] }
 0x246   : > { %1792 = vmatpush.msra.mxu3 %v1781_v44  ;;  %v1843_v20 = vld [vmem:[#allocation28 + $0x30] sm:$0xff] }
 0x247   : > { %1556 = vmatpush.msrb.mxu0 %v1541_v45  ;;  %v1761_v45 = vld [vmem:[#allocation25 + $0x50] sm:$0xff] }
 0x249   : > { %1557 = vmatpush.msrb.mxu0 %v1540_v46  ;;  %v1848_v46 = vld [vmem:[#allocation28 + $0x58] sm:$0xff] }
 0x24a   : > { %2205 = vmatmul.msk.f32.gmra.mxu0 %vm1404_vm11, %v3488_v47  ;;  %1857 = vmatpush.msrb.mxu1 %v1848_v46 }
 0x24b   : > { %1558 = vmatpush.msrb.mxu0 %v1539_v48  ;;  %v1780_v48 = vld [vmem:[#allocation27 + $0x48] sm:$0xff] }
 0x24c   : > { %1793 = vmatpush.msra.mxu3 %v1780_v48 }
 0x24d   : > { %1559 = vmatpush.msrb.mxu0 %v1538_v49  ;;  %v1760_v49 = vld [vmem:[#allocation25 + $0x48] sm:$0xff] }
 0x24f   : > { %1560 = vmatpush.msrb.mxu0 %v1537_v50 }
 0x251   : > { %1561 = vmatpush.msrb.mxu0 %v1536_v51  ;;  %v1779_v51 = vld [vmem:[#allocation27 + $0x40] sm:$0xff] }
 0x252   : > { %1794 = vmatpush.msra.mxu3 %v1779_v51 }
 0x253   : > { %1562 = vmatpush.msrb.mxu0 %v1535_v52  ;;  %v1759_v52 = vld [vmem:[#allocation25 + $0x40] sm:$0xff] }
 0x255   : > { %1563 = vmatpush.msrb.mxu0 %v1534_v53  ;;  %v1778_v53 = vld [vmem:[#allocation27 + $0x38] sm:$0xff] }
 0x256   : > { %1795 = vmatpush.msra.mxu3 %v1778_v53 }
 0x257   : > { %1564 = vmatpush.msrb.mxu0 %v1533_v54  ;;  %v1758_v54 = vld [vmem:[#allocation25 + $0x38] sm:$0xff] }
 0x259   : > { %1565 = vmatpush.msrb.mxu0 %v1532_v55 }
 0x25a   : > { %2210 = vmatmul.msk.f32.vlgmr.msrb.gmra.mxu0 %vm895_vm3, %v1530_v56 }
 0x25b   : > { %1810 = vmatpush.msra.mxu0 %v1766_v30  ;;  %v1841_v30 = vld [vmem:[#allocation28 + $0x20] sm:$0xff] }
 0x25d   : > { %1811 = vmatpush.msra.mxu0 %v1765_v32  ;;  %v1839_v32 = vld [vmem:[#allocation28 + $0x10] sm:$0xff] }
 0x25f   : > { %1812 = vmatpush.msra.mxu0 %v1764_v34 }
 0x261   : > { %1813 = vmatpush.msra.mxu0 %v1763_v37  ;;  %v1838_v37 = vld [vmem:[#allocation28 + $0x8] sm:$0xff] }
 0x262   : > { %2211 = vmatmul.msk.f32.gmra.mxu0 %vm895_vm3, %v1531_v57  ;;  %v1777_v57 = vld [vmem:[#allocation27 + $0x30] sm:$0xff] }
 0x263   : > { %1814 = vmatpush.msra.mxu0 %v1762_v41  ;;  %1796 = vmatpush.msra.mxu3 %v1777_v57  ;;  %v1837_v41 = vld [vmem:[#allocation28] sm:$0xff] }
 0x265   : > { %1815 = vmatpush.msra.mxu0 %v1761_v45  ;;  %1797 = vmatpush.msra.mxu3 %v1776_v58 }
 0x267   : > { %1816 = vmatpush.msra.mxu0 %v1760_v49  ;;  %1798 = vmatpush.msra.mxu3 %v1775_v59 }
 0x269   : > { %1817 = vmatpush.msra.mxu0 %v1759_v52  ;;  %1799 = vmatpush.msra.mxu3 %v1774_v61 }
 0x26b   : > { %1818 = vmatpush.msra.mxu0 %v1758_v54 }
 0x26d   : > { %1819 = vmatpush.msra.mxu0 %v1757_v62 }
 0x2bf   : > { %v1431_v1 = vpop.f32.mrf.mxu0 }
 0x2c0   : > { %v3495_v3 = vadd.f32 %v1431_v1, %v1357_v63  ;;  %v1847_v63 = vld [vmem:[#allocation28 + $0x50] sm:$0xff] }
 0x2c1   : > { %v1773_v1 = vld [vmem:[#allocation27 + $0x10] sm:$0xff]  ;;  %1858 = vmatpush.msrb.mxu1 %v1847_v63 }
 0x2c2   : > { %1440 = vst [vmem:[#allocation2 + $0x31] sm:$0xff] %v3495_v3  ;;  %1663 = vrot.lane.b32.xlu2 %v3495_v3, %s3017_s7  ;;  %1655 = vrot.lane.b32.xlu1 %v3495_v3, %s3018_s23 }
 0x2c3   : > { %1442 = vst [vmem:[%s3502_s9] sm:$0xff] %v3495_v3  ;;  %1800 = vmatpush.msra.mxu3 %v1773_v1  ;;  %1859 = vmatpush.msrb.mxu1 %v1846_v4 }
 0x2c5   : > { %1801 = vmatpush.msra.mxu3 %v1772_v5 }
 0x2c7   : > { %v1434_v9 = vpop.f32.mrf.mxu0 }
 0x2c8   : > { %v3506_v10 = vadd.f32 %v1434_v9, %v1358_v8  ;;  %v1845_v8 = vld [vmem:[#allocation28 + $0x40] sm:$0xff]  ;;  %v1754_v9 = vld [vmem:[#allocation25 + $0x18] sm:$0xff] }
 0x2c9   : > { %v1618_v11 = vld [vmem:[#allocation2 + $0x30] sm:$0xff]  ;;  %1860 = vmatpush.msrb.mxu1 %v1845_v8 }
 0x2ca   : > { %1441 = vst [vmem:[#allocation2 + $0x39] sm:$0xff] %v3506_v10  ;;  %v3509_v12 = vsel %vm1623_vm12, %v1618_v11, -1e+30 }
 0x2cb   : > { %1443 = vst [vmem:[%s3502_s9 + $0x8] sm:$0xff] %v3506_v10  ;;  %1629 = vrot.lane.b32.xlu0 %v3509_v12, %s3018_s23  ;;  %1861 = vmatpush.msrb.mxu1 %v1844_v14 }
 0x2cd   : > { %1862 = vmatpush.msrb.mxu1 %v1843_v20 }
 0x2d1   : > { %v3515_v15 = vld [vmem:[#allocation2 + $0x38] sm:$0xff] }
 0x2d2   : > { %1640 = vrot.lane.b32.xlu2 %v3515_v15, %s3017_s7  ;;  %1631 = vrot.lane.b32.xlu1 %v3515_v15, %s3018_s23  ;;  %v3523_v19 = vld [vmem:[#allocation2 + $0x32] sm:$0xff]  ;;  %v1678_v25 = vld [vmem:[#allocation2 + $0x3a] sm:$0xff] }
 0x2d3   : > { %1638 = vrot.lane.b32.xlu0 %v3509_v12, %s3017_s7  ;;  %v3532_v28 = vsel %vm1680_vm13, %v1678_v25, -1e+30  ;;  %v1842_v25 = vld [vmem:[#allocation28 + $0x28] sm:$0xff] }
 0x2d4   : > { %1863 = vmatpush.msrb.mxu1 %v1842_v25 }
 0x2d6   : > { %1864 = vmatpush.msrb.mxu1 %v1841_v30 }
 0x2d7   : > { %v1567_v17 = vpop.f32.mrf.mxu0 }
 0x2d8   : > { %v1573_v18 = vadd.f32 %v1567_v17, %v1525_v16  ;;  %v1771_v16 = vld [vmem:[#allocation27] sm:$0xff]  ;;  %1865 = vmatpush.msrb.mxu1 %v1840_v31 }
 0x2d9   : > { %1802 = vmatpush.msra.mxu3 %v1771_v16 }
 0x2da   : > { %2212 = vmatmul.msk.f32.vlgmr.msra.gmra.mxu1 %vm895_vm3, %v1573_v18  ;;  %1693 = vrot.lane.b32.xlu2 %v3523_v19, %s3017_s7 }
 0x2db   : > { %1657 = vrot.lane.b32.xlu1 %v3506_v10, %s3018_s23  ;;  %1685 = vrot.lane.b32.xlu0 %v3523_v19, %s3018_s23 }
 0x2dc   : > { %1866 = vmatpush.msrb.mxu1 %v1839_v32 }
 0x2de   : > { %1867 = vmatpush.msrb.mxu1 %v1838_v37 }
 0x2df   : > { %v1570_v26 = vpop.f32.mrf.mxu0 }
 0x2e0   : > { %v1574_v27 = vadd.f32 %v1570_v26, %v1528_v24  ;;  %v1752_v24 = vld [vmem:[#allocation25 + $0x8] sm:$0xff]  ;;  %1868 = vmatpush.msrb.mxu1 %v1837_v41 }
 0x2e2   : > { %2213 = vmatmul.msk.f32.gmra.mxu1 %vm895_vm3, %v1574_v27  ;;  %1695 = vrot.lane.b32.xlu2 %v3532_v28, %s3017_s7 }
 0x2e3   : > { %1687 = vrot.lane.b32.xlu1 %v3532_v28, %s3018_s23  ;;  %1665 = vrot.lane.b32.xlu0 %v3506_v10, %s3017_s7 }
 0x31c   : > { %v1664_v17 = vpop.permute.xlu2 %1663 }
 0x31d   : > { %v1669_v38 = vsel %vm1644_vm15, %v1664_v17, -1e+30 }
 0x32c   : > { %v1641_v33 = vpop.permute.xlu2 %1640 }
 0x32d   : > { %v1646_v39 = vsel %vm1644_vm15, %v1641_v33, -1e+30 }
 0x334   : > { %v1656_v60 = vpop.permute.xlu1 %1655  ;;  %v1694_v49 = vpop.permute.xlu2 %1693 }
 0x335   : > { %v1661_v23 = vsel %vm1635_vm14, -1e+30, %v1656_v60  ;;  %v1699_v54 = vsel %vm1644_vm15, %v1694_v49, -1e+30 }
 0x33c   : > { %v1696_v60 = vpop.permute.xlu2 %1695 }
 0x33d   : > { %v1630_v56 = vpop.permute.xlu0 %1629 }
 0x344   : > { %v1632_v13 = vpop.permute.xlu1 %1631 }
 0x345   : > { %v1639_v2 = vpop.permute.xlu0 %1638  ;;  %v1637_v27 = vsel %vm1635_vm14, -1e+30, %v1632_v13 }
 0x346   : > { %v1645_v6 = vsel %vm1644_vm15, %v1639_v2, -1e+30  ;;  %v1648_v34 = vmax.f32 %v1637_v27, %v3515_v15 }
 0x348   : > { %v1650_v43 = vmax.f32 %v1648_v34, %v1646_v39 }
 0x34d   : > { %v1658_v35 = vpop.permute.xlu1 %1657 }
 0x34e   : > { %v1662_v40 = vsel %vm1635_vm14, -1e+30, %v1658_v35 }
 0x34f   : > { %v1672_v46 = vmax.f32 %v1650_v43, %v1662_v40 }
 0x355   : > { %v1688_v52 = vpop.permute.xlu1 %1687 }
 0x357   : > { %v1612_v50 = vpop.f32.mrf.mxu1 }
 0x35f   : > { %v1615_v55 = vpop.f32.mrf.mxu1 }
 0x360   : > { %2214 = vmatpush.msk.msrb.mxu2 %vm949_vm0, %v1615_v55  ;;  %v1692_v55 = vsel %vm1635_vm14, -1e+30, %v1688_v52 }
 0x362   : > { %1731 = vmatpush.msrb.mxu2 %v1612_v50  ;;  %v1674_v50 = vmax.f32 %v1672_v46, %v3506_v10  ;;  %v1700_v10 = vsel %vm1644_vm15, %v1696_v60, -1e+30 }
 0x363   : > { %2215 = vmatmul.msk.f32.vlgmr.msrb.gmra.mxu2 %vm1404_vm11, %v3481_v42  ;;  %v1636_v42 = vsel %vm1635_vm14, -1e+30, %v1630_v56 }
 0x364   : > { %v1647_v11 = vmax.f32 %v1636_v42, %v3509_v12  ;;  %v1686_v12 = vpop.permute.xlu0 %1685 }
 0x365   : > { %v1691_v45 = vsel %vm1635_vm14, -1e+30, %v1686_v12 }
 0x366   : > { %v1649_v18 = vmax.f32 %v1647_v11, %v1645_v6 }
 0x368   : > { %v1671_v26 = vmax.f32 %v1649_v18, %v1661_v23 }
 0x36a   : > { %v1673_v36 = vmax.f32 %v1671_v26, %v3495_v3 }
 0x36b   : > { %2216 = vmatmul.msk.f32.gmra.mxu2 %vm1404_vm11, %v3488_v47  ;;  %v1756_v47 = vld [vmem:[#allocation25 + $0x28] sm:$0xff] }
 0x36c   : > { %1820 = vmatpush.msra.mxu0 %v1756_v47  ;;  %v1675_v44 = vmax.f32 %v1673_v36, %v1669_v38  ;;  %v1666_v15 = vpop.permute.xlu0 %1665 }
 0x36d   : > { %v1670_v3 = vsel %vm1644_vm15, %v1666_v15, -1e+30 }
 0x36e   : > { %1821 = vmatpush.msra.mxu0 %v1755_v7  ;;  %v1701_v48 = vmax.f32 %v1675_v44, %v1691_v45  ;;  %v1676_v53 = vmax.f32 %v1674_v50, %v1670_v3 }
 0x370   : > { %1822 = vmatpush.msra.mxu0 %v1754_v9  ;;  %v1703_v51 = vmax.f32 %v1701_v48, %v3523_v19  ;;  %v1702_v56 = vmax.f32 %v1676_v53, %v1692_v55 }
 0x372   : > { %1823 = vmatpush.msra.mxu0 %v1753_v0  ;;  %v1705_v57 = vmax.f32 %v1703_v51, %v1699_v54  ;;  %v1704_v61 = vmax.f32 %v1702_v56, %v3532_v28 }
 0x374   : > { %1824 = vmatpush.msra.mxu0 %v1752_v24  ;;  %v1706_v19 = vmax.f32 %v1704_v61, %v1700_v10 }
 0x376   : > { %1825 = vmatpush.msra.mxu0 %v1751_v29 }
 0x3e6   : > { %v1733_v58 = vpop.f32.mrf.mxu2 }
 0x3e7   : > { %v1734_v59 = vadd.f32 %v1733_v58, %v1705_v57 }
 0x3e9   : > { %1740 = vst [vmem:[#allocation2 + $0x49] sm:$0xff] %v1734_v59  ;;  %v1769_v62 = vmax.f32 %v1734_v59, 0.0 }
 0x3ea   : > { %2217 = vst [vmem:[%s3502_s9 + $0x10] sm:$0xff] %v1734_v59 }
 0x3eb   : > { %1803 = vmatmul.f32.vlgmr.msra.gmra.mxu3 %v1769_v62 }
 0x3ee   : > { %v1736_v63 = vpop.f32.mrf.mxu2 }
 0x3ef   : > { %v1737_v1 = vadd.f32 %v1736_v63, %v1706_v19 }
 0x3f0   : > { %v1747_v2 = vld [vmem:[#allocation2 + $0x48] sm:$0xff] }
 0x3f1   : > { %1741 = vst [vmem:[#allocation2 + $0x51] sm:$0xff] %v1737_v1  ;;  %v1749_v42 = vmax.f32 %v1747_v2, 0.0  ;;  %v1770_v47 = vmax.f32 %v1737_v1, 0.0 }
 0x3f2   : > { %2218 = vst [vmem:[%s3502_s9 + $0x18] sm:$0xff] %v1737_v1 }
 0x3f3   : > { %1826 = vmatmul.f32.vlgmr.msra.gmra.mxu0 %v1749_v42  ;;  %1806 = vmatmul.f32.gmra.mxu3 %v1770_v47 }
 0x3f8   : > { %v1748_v4 = vld [vmem:[#allocation2 + $0x50] sm:$0xff] }
 0x3f9   : > { %v1833_v5 = vld [vmem:[#allocation2 + $0x4a] sm:$0xff]  ;;  %v1750_v6 = vmax.f32 %v1748_v4, 0.0  ;;  %v1834_v7 = vld [vmem:[#allocation2 + $0x52] sm:$0xff] }
 0x3fa   : > { %v1835_v28 = vmax.f32 %v1833_v5, 0.0  ;;  %v1836_v8 = vmax.f32 %v1834_v7, 0.0 }
 0x3fb   : > { %1829 = vmatmul.f32.gmra.mxu0 %v1750_v6 }
 0x3fc   : > { %1869 = vmatmul.f32.vlgmr.msrb.gmra.mxu1 %v1835_v28 }
 0x404   : > { %1872 = vmatmul.f32.gmra.mxu1 %v1836_v8 }
 0x46e   : > { %v1804_v11 = vpop.f32.mrf.mxu3 }
 0x470   : > { %v1827_v9 = vpop.f32.mrf.mxu0 }
 0x471   : > { %v1828_v13 = vadd.f32 %v1827_v9, %v1804_v11 }
 0x476   : > { %v1807_v0 = vpop.f32.mrf.mxu3 }
 0x478   : > { %v1830_v18 = vpop.f32.mrf.mxu0 }
 0x479   : > { %v1870_v14 = vpop.f32.mrf.mxu1  ;;  %v1831_v20 = vadd.f32 %v1830_v18, %v1807_v0 }
 0x47a   : > { %v1876_v16 = vadd.f32 %v1870_v14, %v1828_v13 }
 0x47c   : > { %v1878_v17 = vadd.f32 %v1876_v16, %v3403_v21 }
 0x47e   : > { %2219 = vst [vmem:[%s3502_s9 + $0x20] sm:$0xff] %v1878_v17 }
 0x481   : > { %v1873_v23 = vpop.f32.mrf.mxu1 }
 0x482   : > { %v1877_v24 = vadd.f32 %v1873_v23, %v1831_v20 }
 0x484   : > { %v1879_v25 = vadd.f32 %v1877_v24, %v3406_v22 }
 0x486   : > { %2220 = vst [vmem:[%s3502_s9 + $0x28] sm:$0xff] %v1879_v25 }
 0x487   : > { %s2226_s22 = sshll.u32 %s3145_s21, 4  ;;  %s1909_s0 = sshll.u32 %s3502_s9, 4  ;;  %s1910_s0 = int_to_ptr.vmem [resolvable:$true] %s1909_s0 }
 0x488   : > { %s3667_s6 = sld [smem:[#allocation56_spill]]  ;;  %s3019_s1 = smov 256  }
 0x489   : > { %2290 = sst [smem:[#allocation32]] (%p3299_p13), %s3019_s1  ;;  %s3020_s20 = smov 512  }
 0x48a   : > { %2291 = sst [smem:[#allocation32 + $0x1]] (%p3299_p13), %s3020_s20  ;;  %s3021_s5 = smov 2  }
 0x48b   : > { %2292 = sst [smem:[#allocation32 + $0x2]] (%p3299_p13), %s3021_s5  ;;  %s3022_s21 = smov 128  }
 0x48c   : > { %2293 = sst [smem:[#allocation32 + $0x3]] (%p3299_p13), %s3022_s21  ;;  %s3023_s7 = smov 8  }
 0x48d   : > { %2294 = sst [smem:[#allocation32 + $0x4]] (%p3299_p13), %s3022_s21  ;;  %s3024_s23 = smov [#allocation31]  }
 0x48e   : > { %s1898_s26 = scalar_lea.hbm %s3667_s6, %s2226_s22  ;;  %2295 = sst [smem:[#allocation32 + $0x5]] (%p3299_p13), %s3023_s7 }
 0x48f   : > { %s1911_s8 = sshll.u32 %s1898_s26, 4  ;;  %s3025_s9 = smov 0   ;;  %s1912_s8 = int_to_ptr.hbm [resolvable:$true] %s1911_s8 }
 0x490   : > { %2296 = dma.general (%p3299_p13), %s1910_s0, 768, %s1912_s8, %s1887_s27, %s3024_s23, [#allocation32], %s3025_s9, 0  }
 0x491 PF: > { %s3668_s22 = sld [smem:[#allocation43_spill]]  ;;  %p3669_p1 = scmp.ge.s32.totalorder %s2995_s30, 2 }
 0x493   : > { %p2349_p5 = pnand %p3669_p1, %p3304_p4 }
 0x495   : > { %p2350_p12 = pneg %p2349_p5 }
 0x497   : > { %s1939_s2 = sand.u32 1, %s3668_s22  }
 0x498   : > { %s1940_s19 = scalar_lea.sflag [#allocation6], %s1939_s2 }
 0x499   : > { %2978 = dma.done.wait (%p2350_p12), %s1940_s19, 768  }
 0x49a   : > { %2980 = vsyncadd (%p2350_p12), %s1940_s19, 4294966528  ;;  %p39_p8 = scmp.ge.s32.totalorder %s3279_s10, 4   ;;  %s3670_s27 = smov %s2987_s28 }
 0x49b   : > { %s3671_s28 = smov %s2991_s29  ;;  %s3672_s29 = smov %s3291_s4 }
 0x49c   : > { %s3673_s30 = smov %s3279_s10  ;;  %41 = sbr.rel (!%p39_p8) target bundleno = 26 (0x1a), region = 211 }
 0x4a1   :  { %1946 = vsyncpa [#allocation5], 1 }
 0x4a2   :  { %1948 = vsyncpa [#allocation5 + $0x1], 1 }
 0x4a3   :  { %1949 = vsyncpa [#allocation8], 1 }
 0x4a4   :  { %1950 = vsyncpa [#allocation11], 1 }
 0x4a5   :  { %1951 = vsyncpa [#allocation14], 1 }
 0x4a6   :  { %1952 = vsyncpa [#allocation17], 1 }
 0x4a7   :  { %1953 = vsyncpa [#allocation20], 1 }
 0x4a8   :  { %1954 = vsyncpa [#allocation23], 1 }
 0x4a9   :  { %1955 = vsyncpa [#allocation26], 1 }
 0x4aa   :  { %1956 = vsyncpa [#allocation29], 1 }
 0x4ab   :  { %1957 = vsyncpa [#allocation6], 1 }
 0x4ac   :  { %1959 = vsyncpa [#allocation6 + $0x1], 1 }

</bundles_post_ra>
